<compile_context>
chip_gen: v7x
topology: tpu7x:2x2x1
jax: 0.10.0
libtpu: 0.0.40
codegen_flags: <defaults>
</compile_context>

<pallas_src>
import functools

import jax
import jax.numpy as jnp
from jax.experimental import pallas as pl
from jax.experimental.pallas import tpu as pltpu

BN_EPS = 1e-5


def _softplus(x):
    # matches torch.nn.Softplus(beta=1, threshold=20); exp overflow for
    # x > threshold is discarded by the where.
    return jnp.where(x > 20.0, x, jnp.log1p(jnp.exp(x)))


def conv_layer_kernel(
    edge_ref, sidx_ref, nidx_ref, atom_ref,
    ws_ref, wn_ref, we_ref, b_ref,
    g1_ref, be1_ref, g2_ref, be2_ref,
    out_ref,
    selfk, nbrk, gcache, s1, css, mu1, sc1, sh1, nsum,
    *, n_atoms, m_nbrs, tile_atoms, atom_fea, inv_rows):
    p = pl.program_id(0)          # 0: GEMM + sum, 1: centered sum-sq, 2: apply
    t = pl.program_id(1)          # atom tile
    last_t = pl.num_programs(1) - 1
    rows_t = tile_atoms * m_nbrs

    row0 = t * rows_t
    atom0 = t * tile_atoms
    if rows_t % 8 == 0:
        row0 = pl.multiple_of(row0, 8)
    if tile_atoms % 8 == 0:
        atom0 = pl.multiple_of(atom0, 8)

    # ---- one-time init: per-atom linear tables + stat accumulators --------
    @pl.when((p == 0) & (t == 0))
    def _init():
        atom = atom_ref[...]
        selfk[...] = (jnp.dot(atom, ws_ref[...],
                              preferred_element_type=jnp.float32) + b_ref[...])
        nbrk[...] = jnp.dot(atom, wn_ref[...],
                            preferred_element_type=jnp.float32)
        s1[...] = jnp.zeros_like(s1)
        css[...] = jnp.zeros_like(css)

    # ---- pass 0: fused gather + merged filter|core GEMM, cache gated ------
    @pl.when(p == 0)
    def _pass0():
        cols = jax.lax.broadcasted_iota(jnp.int32, (rows_t, n_atoms), 1)
        self_oh = (cols == sidx_ref[...]).astype(jnp.float32)   # exact select
        nbr_oh = (cols == nidx_ref[...]).astype(jnp.float32)    # exact select
        gated = (jnp.dot(self_oh, selfk[...],
                         preferred_element_type=jnp.float32)
                 + jnp.dot(nbr_oh, nbrk[...],
                           preferred_element_type=jnp.float32)
                 + jnp.dot(edge_ref[...], we_ref[...],
                           preferred_element_type=jnp.float32))
        gcache[pl.ds(row0, rows_t), :] = gated
        s1[...] += jnp.sum(gated, axis=0, keepdims=True)

    # ---- pass 1: shifted (centered) bn1 variance from the VMEM cache ------
    @pl.when(p == 1)
    def _pass1():
        @pl.when(t == 0)
        def _():
            mu1[...] = s1[...] * inv_rows
        d = gcache[pl.ds(row0, rows_t), :] - mu1[...]
        css[...] += jnp.sum(d * d, axis=0, keepdims=True)

    # ---- pass 2: bn1 apply, gate, neighbor-sum, bn2 + residual ------------
    @pl.when(p == 2)
    def _pass2():
        @pl.when(t == 0)
        def _():
            scale = g1_ref[...] * jax.lax.rsqrt(css[...] * inv_rows + BN_EPS)
            sc1[...] = scale
            sh1[...] = be1_ref[...] - mu1[...] * scale

        norm = gcache[pl.ds(row0, rows_t), :] * sc1[...] + sh1[...]
        filt = jax.nn.sigmoid(norm[:, :atom_fea])
        core = _softplus(norm[:, atom_fea:])
        prod = filt * core                                    # (rows_t, A)

        # Neighbor reduction as an MXU segment-sum (rows of one atom are the
        # M consecutive rows of the atom-major tile).  Avoids in-kernel value
        # reshapes; cheap at these sizes.
        r_io = jax.lax.broadcasted_iota(jnp.int32, (tile_atoms, rows_t), 1)
        a_io = jax.lax.broadcasted_iota(jnp.int32, (tile_atoms, rows_t), 0)
        seg = ((r_io >= a_io * m_nbrs)
               & (r_io < (a_io + 1) * m_nbrs)).astype(jnp.float32)
        nsum[pl.ds(atom0, tile_atoms), :] = jnp.dot(
            seg, prod, preferred_element_type=jnp.float32)

        @pl.when(t == last_t)
        def _finalize():
            ns = nsum[...]
            mu2 = jnp.mean(ns, axis=0, keepdims=True)
            var2 = jnp.mean(jnp.square(ns - mu2), axis=0, keepdims=True)
            ns = ((ns - mu2) * jax.lax.rsqrt(var2 + BN_EPS)
                  * g2_ref[...] + be2_ref[...])
            out_ref[...] = _softplus(atom_ref[...] + ns)


def _pick_tile_atoms(n_atoms, m_nbrs):
    """Atoms per grid step.  Single tile for small problems (no alignment
    constraints); otherwise a multiple-of-16 divisor of n_atoms keeping the
    per-step row count around a couple thousand."""
    if n_atoms * m_nbrs <= 2048:
        return n_atoms
    target = max(16, 2048 // m_nbrs)
    for tn in range(min(n_atoms, target), 15, -1):
        if n_atoms % tn == 0 and tn % 16 == 0:
            return tn
    return n_atoms


def init_params(key, atom_fea_len, nbr_fea_len):
    in_dim = 2 * atom_fea_len + nbr_fea_len
    out_dim = 2 * atom_fea_len
    k1, k2 = jax.random.split(key)
    bound = 1.0 / (in_dim ** 0.5)
    return {
        # fc_full: Linear(in_dim, out_dim), stored as [in_dim, out_dim]
        "w": jax.random.uniform(k1, (in_dim, out_dim), jnp.float32, -bound, bound),
        "b": jax.random.uniform(k2, (1, out_dim), jnp.float32, -bound, bound),
        # BatchNorm1d affine params at PyTorch defaults (weight=1, bias=0)
        "bn1_gamma": jnp.ones((1, out_dim), jnp.float32),
        "bn1_beta": jnp.zeros((1, out_dim), jnp.float32),
        "bn2_gamma": jnp.ones((1, atom_fea_len), jnp.float32),
        "bn2_beta": jnp.zeros((1, atom_fea_len), jnp.float32),
    }


def conv_layer_forward(atom_in_fea, nbr_fea, nbr_fea_idx, params):
    N, A = atom_in_fea.shape
    _, M, Nb = nbr_fea.shape
    R = N * M
    fea2 = 2 * A

    tile_atoms = _pick_tile_atoms(N, M)
    n_tiles = N // tile_atoms
    rows_t = tile_atoms * M

    # Atom-major flattening (row = n*M + m): contiguous, zero-copy views —
    # no XLA transpose or gather kernel before the Pallas call.
    edge = nbr_fea.reshape(R, Nb).astype(jnp.bfloat16)          # streamed bf16
    nidx = nbr_fea_idx.astype(jnp.int32).reshape(R, 1)
    sidx = jnp.repeat(jnp.arange(N, dtype=jnp.int32), M).reshape(R, 1)

    # fc_full split row-wise into [self | neighbor | edge]; filter/core halves
    # stay merged (single (·, 2A) GEMM output, split by lane slice in-kernel).
    w, b = params["w"], params["b"]
    ws = w[:A]                                   # (A, 2A)
    wn = w[A:2 * A]                              # (A, 2A)
    we = w[2 * A:].astype(jnp.bfloat16)          # (Nb, 2A), bf16 for MXU/HBM

    kernel = functools.partial(
        conv_layer_kernel, n_atoms=N, m_nbrs=M, tile_atoms=tile_atoms,
        atom_fea=A, inv_rows=1.0 / R)

    # Streamed inputs stop re-fetching in passes 1/2 (index gated on pass id).
    stream = lambda shp: pl.BlockSpec(
        shp, lambda p, t: (t * jnp.maximum(1 - p, 0), 0))
    resident = lambda shp: pl.BlockSpec(shp, lambda p, t: (0, 0))

    cost = pl.CostEstimate(
        flops=(4 * R * N * fea2 + 2 * R * Nb * fea2 + 4 * N * A * fea2
               + 2 * N * rows_t * A),
        transcendentals=3 * R * A + 2 * N * A,
        bytes_accessed=(2 * R * Nb + 8 * R + 8 * N * A + 8 * A * fea2
                        + 2 * Nb * fea2 + 24 * fea2 + 16 * A),
    )

    return pl.pallas_call(
        kernel,
        out_shape=jax.ShapeDtypeStruct((N, A), jnp.float32),
        grid_spec=pltpu.PrefetchScalarGridSpec(
            num_scalar_prefetch=0,
            grid=(3, n_tiles),                   # (pass, atom tile)
            in_specs=[
                stream((rows_t, Nb)),            # edge features (bf16)
                stream((rows_t, 1)),             # self-atom index column
                stream((rows_t, 1)),             # neighbor-atom index column
                resident((N, A)),                # atom_in_fea
                resident((A, fea2)),             # W_self
                resident((A, fea2)),             # W_nbr
                resident((Nb, fea2)),            # W_edge (bf16)
                resident((1, fea2)),             # bias
                resident((1, fea2)),             # bn1 gamma
                resident((1, fea2)),             # bn1 beta
                resident((1, A)),                # bn2 gamma
                resident((1, A)),                # bn2 beta
            ],
            out_specs=pl.BlockSpec((N, A), lambda p, t: (0, 0)),
            scratch_shapes=[
                pltpu.VMEM((N, fea2), jnp.float32),   # selfk = atom@Ws + b
                pltpu.VMEM((N, fea2), jnp.float32),   # nbrk  = atom@Wn
                pltpu.VMEM((R, fea2), jnp.float32),   # gcache (cached gated)
                pltpu.VMEM((1, fea2), jnp.float32),   # s1   bn1 sum
                pltpu.VMEM((1, fea2), jnp.float32),   # css  bn1 centered sumsq
                pltpu.VMEM((1, fea2), jnp.float32),   # mu1
                pltpu.VMEM((1, fea2), jnp.float32),   # sc1  bn1 scale
                pltpu.VMEM((1, fea2), jnp.float32),   # sh1  bn1 shift
                pltpu.VMEM((N, A), jnp.float32),      # nsum neighbor sums
            ],
        ),
        compiler_params=pltpu.CompilerParams(
            # Both grid axes carry accumulator state -> sequential.
            dimension_semantics=("arbitrary", "arbitrary"),
            # 48 MiB fits v7x's 64 MiB physical VMEM with headroom; v5e/v6e
            # (128 MiB) could go higher if gcache / tiles are enlarged.
            vmem_limit_bytes=48 * 1024 * 1024,
        ),
        cost_estimate=cost,
    )(edge, sidx, nidx, atom_in_fea,
      ws, wn, we, b,
      params["bn1_gamma"], params["bn1_beta"],
      params["bn2_gamma"], params["bn2_beta"])


def _reference_forward(atom_in_fea, nbr_fea, nbr_fea_idx, params):
    # pure-JAX reference mirroring the PyTorch module (training-mode BN)
    N, A = atom_in_fea.shape
    _, M, Nb = nbr_fea.shape
    atom_nbr = atom_in_fea[nbr_fea_idx]
    total = jnp.concatenate(
        [jnp.broadcast_to(atom_in_fea[:, None, :], (N, M, A)), atom_nbr, nbr_fea],
        axis=2).reshape(N * M, 2 * A + Nb)
    gated = total @ params["w"] + params["b"]
    mu = jnp.mean(gated, axis=0)
    var = jnp.mean((gated - mu) ** 2, axis=0)
    gated = ((gated - mu) / jnp.sqrt(var + BN_EPS)
             * params["bn1_gamma"] + params["bn1_beta"]).reshape(N, M, 2 * A)
    prod = jax.nn.sigmoid(gated[..., :A]) * jax.nn.softplus(gated[..., A:])
    ns = prod.sum(axis=1)
    mu2 = jnp.mean(ns, axis=0)
    var2 = jnp.mean((ns - mu2) ** 2, axis=0)
    ns = (ns - mu2) / jnp.sqrt(var2 + BN_EPS) * params["bn2_gamma"] + params["bn2_beta"]
    return jax.nn.softplus(atom_in_fea + ns)


if __name__ == "__main__":
    atom_fea_len = 32   # A
    nbr_fea_len = 16    # Nb
    N, M = 16, 8        # atoms, neighbors per atom

    key = jax.random.PRNGKey(0)
    k_params, k_atom, k_nbr, k_idx = jax.random.split(key, 4)

    params = init_params(k_params, atom_fea_len, nbr_fea_len)
    atom_in_fea = jax.random.normal(k_atom, (N, atom_fea_len), jnp.float32)
    nbr_fea = jax.random.normal(k_nbr, (N, M, nbr_fea_len), jnp.float32)
    nbr_fea_idx = jax.random.randint(k_idx, (N, M), 0, N, jnp.int32)

    out = conv_layer_forward(atom_in_fea, nbr_fea, nbr_fea_idx, params)
    jax.block_until_ready(out)
    assert out.shape == (N, atom_fea_len)
    assert bool(jnp.all(jnp.isfinite(out)))

    ref = _reference_forward(atom_in_fea, nbr_fea, nbr_fea_idx, params)
    max_err = float(jnp.max(jnp.abs(out - ref)))
    assert max_err < 5e-2, f"mismatch vs reference: {max_err}"

    print("KERNEL_OK")
</pallas_src>

<mosaic_0001>
module attributes {stable_mosaic.version = 11 : i64} {
  func.func @conv_layer_kernel(%arg0: i32, %arg1: i32, %arg2: memref<128x16xbf16, #tpu.memory_space<vmem>>, %arg3: memref<128x1xi32, #tpu.memory_space<vmem>>, %arg4: memref<128x1xi32, #tpu.memory_space<vmem>>, %arg5: memref<16x32xf32, #tpu.memory_space<vmem>>, %arg6: memref<32x64xf32, #tpu.memory_space<vmem>>, %arg7: memref<32x64xf32, #tpu.memory_space<vmem>>, %arg8: memref<16x64xbf16, #tpu.memory_space<vmem>>, %arg9: memref<1x64xf32, #tpu.memory_space<vmem>>, %arg10: memref<1x64xf32, #tpu.memory_space<vmem>>, %arg11: memref<1x64xf32, #tpu.memory_space<vmem>>, %arg12: memref<1x32xf32, #tpu.memory_space<vmem>>, %arg13: memref<1x32xf32, #tpu.memory_space<vmem>>, %arg14: memref<16x32xf32, #tpu.memory_space<vmem>>, %arg15: memref<16x64xf32, #tpu.memory_space<vmem>>, %arg16: memref<16x64xf32, #tpu.memory_space<vmem>>, %arg17: memref<128x64xf32, #tpu.memory_space<vmem>>, %arg18: memref<1x64xf32, #tpu.memory_space<vmem>>, %arg19: memref<1x64xf32, #tpu.memory_space<vmem>>, %arg20: memref<1x64xf32, #tpu.memory_space<vmem>>, %arg21: memref<1x64xf32, #tpu.memory_space<vmem>>, %arg22: memref<1x64xf32, #tpu.memory_space<vmem>>, %arg23: memref<16x32xf32, #tpu.memory_space<vmem>>) attributes {dimension_semantics = [#tpu.dimension_semantics<arbitrary>, #tpu.dimension_semantics<arbitrary>], iteration_bounds = array<i64: 3, 1>, scalar_prefetch = 0 : i64, scratch_operands = 9 : i64, tpu.core_type = #tpu.core_type<tc>, window_params = [{transform_indices = @transform_0, window_bounds = array<i64: 128, 16>}, {transform_indices = @transform_1, window_bounds = array<i64: 128, 1>}, {transform_indices = @transform_2, window_bounds = array<i64: 128, 1>}, {pipeline_mode = #tpu.pipeline_mode<synchronous>, transform_indices = @transform_3, window_bounds = array<i64: 16, 32>}, {pipeline_mode = #tpu.pipeline_mode<synchronous>, transform_indices = @transform_4, window_bounds = array<i64: 32, 64>}, {pipeline_mode = #tpu.pipeline_mode<synchronous>, transform_indices = @transform_5, window_bounds = array<i64: 32, 64>}, {pipeline_mode = #tpu.pipeline_mode<synchronous>, transform_indices = @transform_6, window_bounds = array<i64: 16, 64>}, {pipeline_mode = #tpu.pipeline_mode<synchronous>, transform_indices = @transform_7, window_bounds = array<i64: 1, 64>}, {pipeline_mode = #tpu.pipeline_mode<synchronous>, transform_indices = @transform_8, window_bounds = array<i64: 1, 64>}, {pipeline_mode = #tpu.pipeline_mode<synchronous>, transform_indices = @transform_9, window_bounds = array<i64: 1, 64>}, {pipeline_mode = #tpu.pipeline_mode<synchronous>, transform_indices = @transform_10, window_bounds = array<i64: 1, 32>}, {pipeline_mode = #tpu.pipeline_mode<synchronous>, transform_indices = @transform_11, window_bounds = array<i64: 1, 32>}, {pipeline_mode = #tpu.pipeline_mode<synchronous>, transform_indices = @transform_12, window_bounds = array<i64: 16, 32>}]} {
    %c128_i32 = arith.constant 128 : i32
    %0 = arith.muli %arg1, %c128_i32 : i32
    %c16_i32 = arith.constant 16 : i32
    %1 = arith.muli %arg1, %c16_i32 : i32
    %2 = tpu.assume_multiple %0, 8 : i32
    %3 = tpu.assume_multiple %1, 8 : i32
    %c0_i32 = arith.constant 0 : i32
    %4 = arith.cmpi eq, %arg0, %c0_i32 : i32
    %c0_i32_0 = arith.constant 0 : i32
    %5 = arith.cmpi eq, %arg1, %c0_i32_0 : i32
    %6 = arith.andi %4, %5 : i1
    %7 = arith.extui %6 : i1 to i32
    %c0_i32_1 = arith.constant 0 : i32
    %8 = arith.cmpi ne, %7, %c0_i32_1 : i32
    scf.if %8 {
      %c0 = arith.constant 0 : index
      %c0_6 = arith.constant 0 : index
      %18 = vector.load %arg5[%c0, %c0_6] : memref<16x32xf32, #tpu.memory_space<vmem>>, vector<16x32xf32>
      %c0_7 = arith.constant 0 : index
      %c0_8 = arith.constant 0 : index
      %19 = vector.load %arg6[%c0_7, %c0_8] : memref<32x64xf32, #tpu.memory_space<vmem>>, vector<32x64xf32>
      %cst = arith.constant dense<0.000000e+00> : vector<16x64xf32>
      %20 = tpu.matmul %18, %19, %cst {dimension_numbers = #tpu.dot_dimension_numbers<[1], [0], [0], [1], [0, 0, 1, 1], [], []>} : vector<16x32xf32>, vector<32x64xf32>, vector<16x64xf32> -> vector<16x64xf32>
      %c0_9 = arith.constant 0 : index
      %c0_10 = arith.constant 0 : index
      %21 = vector.load %arg9[%c0_9, %c0_10] : memref<1x64xf32, #tpu.memory_space<vmem>>, vector<1x64xf32>
      %22 = vector.broadcast %21 : vector<1x64xf32> to vector<16x64xf32>
      %23 = arith.addf %20, %22 : vector<16x64xf32>
      %c0_11 = arith.constant 0 : index
      %c0_12 = arith.constant 0 : index
      %24 = vector.load %arg15[%c0_11, %c0_12] : memref<16x64xf32, #tpu.memory_space<vmem>>, vector<16x64xf32>
      tpu.vector_store %arg15[%c0_11, %c0_12], %23 {strides = array<i32>} : memref<16x64xf32, #tpu.memory_space<vmem>>, vector<16x64xf32>,
      %c0_13 = arith.constant 0 : index
      %c0_14 = arith.constant 0 : index
      %25 = vector.load %arg7[%c0_13, %c0_14] : memref<32x64xf32, #tpu.memory_space<vmem>>, vector<32x64xf32>
      %cst_15 = arith.constant dense<0.000000e+00> : vector<16x64xf32>
      %26 = tpu.matmul %18, %25, %cst_15 {dimension_numbers = #tpu.dot_dimension_numbers<[1], [0], [0], [1], [0, 0, 1, 1], [], []>} : vector<16x32xf32>, vector<32x64xf32>, vector<16x64xf32> -> vector<16x64xf32>
      %c0_16 = arith.constant 0 : index
      %c0_17 = arith.constant 0 : index
      %27 = vector.load %arg16[%c0_16, %c0_17] : memref<16x64xf32, #tpu.memory_space<vmem>>, vector<16x64xf32>
      tpu.vector_store %arg16[%c0_16, %c0_17], %26 {strides = array<i32>} : memref<16x64xf32, #tpu.memory_space<vmem>>, vector<16x64xf32>,
      %cst_18 = arith.constant 0.000000e+00 : f32
      %28 = vector.broadcast %cst_18 : f32 to vector<1x64xf32>
      %c0_19 = arith.constant 0 : index
      %c0_20 = arith.constant 0 : index
      %29 = vector.load %arg18[%c0_19, %c0_20] : memref<1x64xf32, #tpu.memory_space<vmem>>, vector<1x64xf32>
      tpu.vector_store %arg18[%c0_19, %c0_20], %28 {strides = array<i32>} : memref<1x64xf32, #tpu.memory_space<vmem>>, vector<1x64xf32>,
      %cst_21 = arith.constant 0.000000e+00 : f32
      %30 = vector.broadcast %cst_21 : f32 to vector<1x64xf32>
      %c0_22 = arith.constant 0 : index
      %c0_23 = arith.constant 0 : index
      %31 = vector.load %arg19[%c0_22, %c0_23] : memref<1x64xf32, #tpu.memory_space<vmem>>, vector<1x64xf32>
      tpu.vector_store %arg19[%c0_22, %c0_23], %30 {strides = array<i32>} : memref<1x64xf32, #tpu.memory_space<vmem>>, vector<1x64xf32>,
    } else {
    }
    %c0_i32_2 = arith.constant 0 : i32
    %9 = arith.cmpi eq, %arg0, %c0_i32_2 : i32
    %10 = arith.extui %9 : i1 to i32
    %c0_i32_3 = arith.constant 0 : i32
    %11 = arith.cmpi ne, %10, %c0_i32_3 : i32
    scf.if %11 {
      %18 = tpu.iota {dimensions = array<i32: 1>} : vector<128x16xi32>
      %c0 = arith.constant 0 : index
      %c0_6 = arith.constant 0 : index
      %19 = vector.load %arg3[%c0, %c0_6] : memref<128x1xi32, #tpu.memory_space<vmem>>, vector<128x1xi32>
      %20 = vector.broadcast %19 : vector<128x1xi32> to vector<128x16xi32>
      %21 = arith.cmpi eq, %18, %20 : vector<128x16xi32>
      %22 = arith.extui %21 : vector<128x16xi1> to vector<128x16xi32>
      %23 = arith.sitofp %22 : vector<128x16xi32> to vector<128x16xf32>
      %c0_7 = arith.constant 0 : index
      %c0_8 = arith.constant 0 : index
      %24 = vector.load %arg4[%c0_7, %c0_8] : memref<128x1xi32, #tpu.memory_space<vmem>>, vector<128x1xi32>
      %25 = vector.broadcast %24 : vector<128x1xi32> to vector<128x16xi32>
      %26 = arith.cmpi eq, %18, %25 : vector<128x16xi32>
      %27 = arith.extui %26 : vector<128x16xi1> to vector<128x16xi32>
      %28 = arith.sitofp %27 : vector<128x16xi32> to vector<128x16xf32>
      %c0_9 = arith.constant 0 : index
      %c0_10 = arith.constant 0 : index
      %29 = vector.load %arg15[%c0_9, %c0_10] : memref<16x64xf32, #tpu.memory_space<vmem>>, vector<16x64xf32>
      %cst = arith.constant dense<0.000000e+00> : vector<128x64xf32>
      %30 = tpu.matmul %23, %29, %cst {dimension_numbers = #tpu.dot_dimension_numbers<[1], [0], [0], [1], [0, 0, 1, 1], [], []>} : vector<128x16xf32>, vector<16x64xf32>, vector<128x64xf32> -> vector<128x64xf32>
      %c0_11 = arith.constant 0 : index
      %c0_12 = arith.constant 0 : index
      %31 = vector.load %arg16[%c0_11, %c0_12] : memref<16x64xf32, #tpu.memory_space<vmem>>, vector<16x64xf32>
      %cst_13 = arith.constant dense<0.000000e+00> : vector<128x64xf32>
      %32 = tpu.matmul %28, %31, %cst_13 {dimension_numbers = #tpu.dot_dimension_numbers<[1], [0], [0], [1], [0, 0, 1, 1], [], []>} : vector<128x16xf32>, vector<16x64xf32>, vector<128x64xf32> -> vector<128x64xf32>
      %33 = arith.addf %30, %32 : vector<128x64xf32>
      %c0_14 = arith.constant 0 : index
      %c0_15 = arith.constant 0 : index
      %34 = vector.load %arg2[%c0_14, %c0_15] : memref<128x16xbf16, #tpu.memory_space<vmem>>, vector<128x16xbf16>
      %c0_16 = arith.constant 0 : index
      %c0_17 = arith.constant 0 : index
      %35 = vector.load %arg8[%c0_16, %c0_17] : memref<16x64xbf16, #tpu.memory_space<vmem>>, vector<16x64xbf16>
      %cst_18 = arith.constant dense<0.000000e+00> : vector<128x64xf32>
      %36 = tpu.matmul %34, %35, %cst_18 {dimension_numbers = #tpu.dot_dimension_numbers<[1], [0], [0], [1], [0, 0, 1, 1], [], []>} : vector<128x16xbf16>, vector<16x64xbf16>, vector<128x64xf32> -> vector<128x64xf32>
      %37 = arith.addf %33, %36 : vector<128x64xf32>
      %38 = arith.index_cast %2 : i32 to index
      %c0_19 = arith.constant 0 : index
      %39 = vector.load %arg17[%38, %c0_19] : memref<128x64xf32, #tpu.memory_space<vmem>>, vector<128x64xf32>
      tpu.vector_store %arg17[%38, %c0_19], %37 {strides = array<i32>} : memref<128x64xf32, #tpu.memory_space<vmem>>, vector<128x64xf32>,
      %c0_20 = arith.constant 0 : index
      %c0_21 = arith.constant 0 : index
      %40 = vector.load %arg18[%c0_20, %c0_21] : memref<1x64xf32, #tpu.memory_space<vmem>>, vector<1x64xf32>
      %cst_22 = arith.constant dense<0.000000e+00> : vector<64xf32>
      %41 = vector.multi_reduction <add>, %37, %cst_22 [0] : vector<128x64xf32> to vector<64xf32>
      %42 = vector.shape_cast %41 : vector<64xf32> to vector<1x64xf32>
      %43 = arith.addf %40, %42 : vector<1x64xf32>
      %c0_23 = arith.constant 0 : index
      %c0_24 = arith.constant 0 : index
      %44 = vector.load %arg18[%c0_23, %c0_24] : memref<1x64xf32, #tpu.memory_space<vmem>>, vector<1x64xf32>
      tpu.vector_store %arg18[%c0_23, %c0_24], %43 {strides = array<i32>} : memref<1x64xf32, #tpu.memory_space<vmem>>, vector<1x64xf32>,
    } else {
    }
    %c1_i32 = arith.constant 1 : i32
    %12 = arith.cmpi eq, %arg0, %c1_i32 : i32
    %13 = arith.extui %12 : i1 to i32
    %c0_i32_4 = arith.constant 0 : i32
    %14 = arith.cmpi ne, %13, %c0_i32_4 : i32
    scf.if %14 {
      %c0_i32_6 = arith.constant 0 : i32
      %18 = arith.cmpi eq, %arg1, %c0_i32_6 : i32
      %19 = arith.extui %18 : i1 to i32
      %c0_i32_7 = arith.constant 0 : i32
      %20 = arith.cmpi ne, %19, %c0_i32_7 : i32
      scf.if %20 {
        %c0_14 = arith.constant 0 : index
        %c0_15 = arith.constant 0 : index
        %32 = vector.load %arg18[%c0_14, %c0_15] : memref<1x64xf32, #tpu.memory_space<vmem>>, vector<1x64xf32>
        %cst_16 = arith.constant 7.812500e-03 : f32
        %33 = vector.broadcast %cst_16 : f32 to vector<1x64xf32>
        %34 = arith.mulf %32, %33 : vector<1x64xf32>
        %c0_17 = arith.constant 0 : index
        %c0_18 = arith.constant 0 : index
        %35 = vector.load %arg20[%c0_17, %c0_18] : memref<1x64xf32, #tpu.memory_space<vmem>>, vector<1x64xf32>
        tpu.vector_store %arg20[%c0_17, %c0_18], %34 {strides = array<i32>} : memref<1x64xf32, #tpu.memory_space<vmem>>, vector<1x64xf32>,
      } else {
      }
      %21 = arith.index_cast %2 : i32 to index
      %c0 = arith.constant 0 : index
      %22 = vector.load %arg17[%21, %c0] : memref<128x64xf32, #tpu.memory_space<vmem>>, vector<128x64xf32>
      %c0_8 = arith.constant 0 : index
      %c0_9 = arith.constant 0 : index
      %23 = vector.load %arg20[%c0_8, %c0_9] : memref<1x64xf32, #tpu.memory_space<vmem>>, vector<1x64xf32>
      %24 = vector.broadcast %23 : vector<1x64xf32> to vector<128x64xf32>
      %25 = arith.subf %22, %24 : vector<128x64xf32>
      %c0_10 = arith.constant 0 : index
      %c0_11 = arith.constant 0 : index
      %26 = vector.load %arg19[%c0_10, %c0_11] : memref<1x64xf32, #tpu.memory_space<vmem>>, vector<1x64xf32>
      %27 = arith.mulf %25, %25 : vector<128x64xf32>
      %cst = arith.constant dense<0.000000e+00> : vector<64xf32>
      %28 = vector.multi_reduction <add>, %27, %cst [0] : vector<128x64xf32> to vector<64xf32>
      %29 = vector.shape_cast %28 : vector<64xf32> to vector<1x64xf32>
      %30 = arith.addf %26, %29 : vector<1x64xf32>
      %c0_12 = arith.constant 0 : index
      %c0_13 = arith.constant 0 : index
      %31 = vector.load %arg19[%c0_12, %c0_13] : memref<1x64xf32, #tpu.memory_space<vmem>>, vector<1x64xf32>
      tpu.vector_store %arg19[%c0_12, %c0_13], %30 {strides = array<i32>} : memref<1x64xf32, #tpu.memory_space<vmem>>, vector<1x64xf32>,
    } else {
    }
    %c2_i32 = arith.constant 2 : i32
    %15 = arith.cmpi eq, %arg0, %c2_i32 : i32
    %16 = arith.extui %15 : i1 to i32
    %c0_i32_5 = arith.constant 0 : i32
    %17 = arith.cmpi ne, %16, %c0_i32_5 : i32
    scf.if %17 {
      %c0_i32_6 = arith.constant 0 : i32
      %18 = arith.cmpi eq, %arg1, %c0_i32_6 : i32
      %19 = arith.extui %18 : i1 to i32
      %c0_i32_7 = arith.constant 0 : i32
      %20 = arith.cmpi ne, %19, %c0_i32_7 : i32
      scf.if %20 {
        %c0_19 = arith.constant 0 : index
        %c0_20 = arith.constant 0 : index
        %61 = vector.load %arg10[%c0_19, %c0_20] : memref<1x64xf32, #tpu.memory_space<vmem>>, vector<1x64xf32>
        %c0_21 = arith.constant 0 : index
        %c0_22 = arith.constant 0 : index
        %62 = vector.load %arg19[%c0_21, %c0_22] : memref<1x64xf32, #tpu.memory_space<vmem>>, vector<1x64xf32>
        %cst_23 = arith.constant 7.812500e-03 : f32
        %63 = vector.broadcast %cst_23 : f32 to vector<1x64xf32>
        %64 = arith.mulf %62, %63 : vector<1x64xf32>
        %cst_24 = arith.constant 9.99999974E-6 : f32
        %65 = vector.broadcast %cst_24 : f32 to vector<1x64xf32>
        %66 = arith.addf %64, %65 : vector<1x64xf32>
        %67 = math.rsqrt %66 : vector<1x64xf32>
        %68 = arith.mulf %61, %67 : vector<1x64xf32>
        %c0_25 = arith.constant 0 : index
        %c0_26 = arith.constant 0 : index
        %69 = vector.load %arg21[%c0_25, %c0_26] : memref<1x64xf32, #tpu.memory_space<vmem>>, vector<1x64xf32>
        tpu.vector_store %arg21[%c0_25, %c0_26], %68 {strides = array<i32>} : memref<1x64xf32, #tpu.memory_space<vmem>>, vector<1x64xf32>,
        %c0_27 = arith.constant 0 : index
        %c0_28 = arith.constant 0 : index
        %70 = vector.load %arg11[%c0_27, %c0_28] : memref<1x64xf32, #tpu.memory_space<vmem>>, vector<1x64xf32>
        %c0_29 = arith.constant 0 : index
        %c0_30 = arith.constant 0 : index
        %71 = vector.load %arg20[%c0_29, %c0_30] : memref<1x64xf32, #tpu.memory_space<vmem>>, vector<1x64xf32>
        %72 = arith.mulf %71, %68 : vector<1x64xf32>
        %73 = arith.subf %70, %72 : vector<1x64xf32>
        %c0_31 = arith.constant 0 : index
        %c0_32 = arith.constant 0 : index
        %74 = vector.load %arg22[%c0_31, %c0_32] : memref<1x64xf32, #tpu.memory_space<vmem>>, vector<1x64xf32>
        tpu.vector_store %arg22[%c0_31, %c0_32], %73 {strides = array<i32>} : memref<1x64xf32, #tpu.memory_space<vmem>>, vector<1x64xf32>,
      } else {
      }
      %21 = arith.index_cast %2 : i32 to index
      %c0 = arith.constant 0 : index
      %22 = vector.load %arg17[%21, %c0] : memref<128x64xf32, #tpu.memory_space<vmem>>, vector<128x64xf32>
      %c0_8 = arith.constant 0 : index
      %c0_9 = arith.constant 0 : index
      %23 = vector.load %arg21[%c0_8, %c0_9] : memref<1x64xf32, #tpu.memory_space<vmem>>, vector<1x64xf32>
      %24 = vector.broadcast %23 : vector<1x64xf32> to vector<128x64xf32>
      %25 = arith.mulf %22, %24 : vector<128x64xf32>
      %c0_10 = arith.constant 0 : index
      %c0_11 = arith.constant 0 : index
      %26 = vector.load %arg22[%c0_10, %c0_11] : memref<1x64xf32, #tpu.memory_space<vmem>>, vector<1x64xf32>
      %27 = vector.broadcast %26 : vector<1x64xf32> to vector<128x64xf32>
      %28 = arith.addf %25, %27 : vector<128x64xf32>
      %29 = vector.extract_strided_slice %28 {offsets = [0, 0], sizes = [128, 32], strides = [1, 1]} : vector<128x64xf32> to vector<128x32xf32>
      %30 = arith.negf %29 : vector<128x32xf32>
      %31 = math.exp %30 : vector<128x32xf32>
      %cst = arith.constant 1.000000e+00 : f32
      %32 = vector.broadcast %cst : f32 to vector<128x32xf32>
      %33 = arith.addf %32, %31 : vector<128x32xf32>
      %34 = arith.divf %32, %33 : vector<128x32xf32>
      %35 = vector.extract_strided_slice %28 {offsets = [0, 32], sizes = [128, 32], strides = [1, 1]} : vector<128x64xf32> to vector<128x32xf32>
      %cst_12 = arith.constant 2.000000e+01 : f32
      %36 = vector.broadcast %cst_12 : f32 to vector<128x32xf32>
      %37 = arith.cmpf ogt, %35, %36 : vector<128x32xf32>
      %38 = math.exp %35 : vector<128x32xf32>
      %39 = math.log1p %38 : vector<128x32xf32>
      %40 = arith.select %37, %35, %39 : vector<128x32xi1>, vector<128x32xf32>
      %41 = arith.mulf %34, %40 : vector<128x32xf32>
      %42 = tpu.iota {dimensions = array<i32: 1>} : vector<16x128xi32>
      %43 = tpu.iota {dimensions = array<i32: 0>} : vector<16x128xi32>
      %c8_i32 = arith.constant 8 : i32
      %44 = vector.broadcast %c8_i32 : i32 to vector<16x128xi32>
      %45 = arith.muli %43, %44 : vector<16x128xi32>
      %46 = arith.cmpi sge, %42, %45 : vector<16x128xi32>
      %c1_i32_13 = arith.constant 1 : i32
      %47 = vector.broadcast %c1_i32_13 : i32 to vector<16x128xi32>
      %48 = arith.addi %43, %47 : vector<16x128xi32>
      %c8_i32_14 = arith.constant 8 : i32
      %49 = vector.broadcast %c8_i32_14 : i32 to vector<16x128xi32>
      %50 = arith.muli %48, %49 : vector<16x128xi32>
      %51 = arith.cmpi slt, %42, %50 : vector<16x128xi32>
      %52 = arith.andi %46, %51 : vector<16x128xi1>
      %53 = arith.extui %52 : vector<16x128xi1> to vector<16x128xi32>
      %54 = arith.sitofp %53 : vector<16x128xi32> to vector<16x128xf32>
      %cst_15 = arith.constant dense<0.000000e+00> : vector<16x32xf32>
      %55 = tpu.matmul %54, %41, %cst_15 {dimension_numbers = #tpu.dot_dimension_numbers<[1], [0], [0], [1], [0, 0, 1, 1], [], []>} : vector<16x128xf32>, vector<128x32xf32>, vector<16x32xf32> -> vector<16x32xf32>
      %56 = arith.index_cast %3 : i32 to index
      %c0_16 = arith.constant 0 : index
      %57 = vector.load %arg23[%56, %c0_16] : memref<16x32xf32, #tpu.memory_space<vmem>>, vector<16x32xf32>
      tpu.vector_store %arg23[%56, %c0_16], %55 {strides = array<i32>} : memref<16x32xf32, #tpu.memory_space<vmem>>, vector<16x32xf32>,
      %c0_i32_17 = arith.constant 0 : i32
      %58 = arith.cmpi eq, %arg1, %c0_i32_17 : i32
      %59 = arith.extui %58 : i1 to i32
      %c0_i32_18 = arith.constant 0 : i32
      %60 = arith.cmpi ne, %59, %c0_i32_18 : i32
      scf.if %60 {
        %c0_19 = arith.constant 0 : index
        %c0_20 = arith.constant 0 : index
        %61 = vector.load %arg23[%c0_19, %c0_20] : memref<16x32xf32, #tpu.memory_space<vmem>>, vector<16x32xf32>
        %cst_21 = arith.constant dense<0.000000e+00> : vector<32xf32>
        %62 = vector.multi_reduction <add>, %61, %cst_21 [0] : vector<16x32xf32> to vector<32xf32>
        %63 = vector.shape_cast %62 : vector<32xf32> to vector<1x32xf32>
        %cst_22 = arith.constant 1.600000e+01 : f32
        %64 = vector.broadcast %cst_22 : f32 to vector<1x32xf32>
        %65 = arith.divf %63, %64 : vector<1x32xf32>
        %66 = vector.broadcast %65 : vector<1x32xf32> to vector<16x32xf32>
        %67 = arith.subf %61, %66 : vector<16x32xf32>
        %68 = arith.mulf %67, %67 : vector<16x32xf32>
        %cst_23 = arith.constant dense<0.000000e+00> : vector<32xf32>
        %69 = vector.multi_reduction <add>, %68, %cst_23 [0] : vector<16x32xf32> to vector<32xf32>
        %70 = vector.shape_cast %69 : vector<32xf32> to vector<1x32xf32>
        %cst_24 = arith.constant 1.600000e+01 : f32
        %71 = vector.broadcast %cst_24 : f32 to vector<1x32xf32>
        %72 = arith.divf %70, %71 : vector<1x32xf32>
        %73 = vector.broadcast %65 : vector<1x32xf32> to vector<16x32xf32>
        %74 = arith.subf %61, %73 : vector<16x32xf32>
        %cst_25 = arith.constant 9.99999974E-6 : f32
        %75 = vector.broadcast %cst_25 : f32 to vector<1x32xf32>
        %76 = arith.addf %72, %75 : vector<1x32xf32>
        %77 = math.rsqrt %76 : vector<1x32xf32>
        %78 = vector.broadcast %77 : vector<1x32xf32> to vector<16x32xf32>
        %79 = arith.mulf %74, %78 : vector<16x32xf32>
        %c0_26 = arith.constant 0 : index
        %c0_27 = arith.constant 0 : index
        %80 = vector.load %arg12[%c0_26, %c0_27] : memref<1x32xf32, #tpu.memory_space<vmem>>, vector<1x32xf32>
        %81 = vector.broadcast %80 : vector<1x32xf32> to vector<16x32xf32>
        %82 = arith.mulf %79, %81 : vector<16x32xf32>
        %c0_28 = arith.constant 0 : index
        %c0_29 = arith.constant 0 : index
        %83 = vector.load %arg13[%c0_28, %c0_29] : memref<1x32xf32, #tpu.memory_space<vmem>>, vector<1x32xf32>
        %84 = vector.broadcast %83 : vector<1x32xf32> to vector<16x32xf32>
        %85 = arith.addf %82, %84 : vector<16x32xf32>
        %c0_30 = arith.constant 0 : index
        %c0_31 = arith.constant 0 : index
        %86 = vector.load %arg5[%c0_30, %c0_31] : memref<16x32xf32, #tpu.memory_space<vmem>>, vector<16x32xf32>
        %87 = arith.addf %86, %85 : vector<16x32xf32>
        %cst_32 = arith.constant 2.000000e+01 : f32
        %88 = vector.broadcast %cst_32 : f32 to vector<16x32xf32>
        %89 = arith.cmpf ogt, %87, %88 : vector<16x32xf32>
        %90 = math.exp %87 : vector<16x32xf32>
        %91 = math.log1p %90 : vector<16x32xf32>
        %92 = arith.select %89, %87, %91 : vector<16x32xi1>, vector<16x32xf32>
        %c0_33 = arith.constant 0 : index
        %c0_34 = arith.constant 0 : index
        %93 = vector.load %arg14[%c0_33, %c0_34] : memref<16x32xf32, #tpu.memory_space<vmem>>, vector<16x32xf32>
        tpu.vector_store %arg14[%c0_33, %c0_34], %92 {strides = array<i32>} : memref<16x32xf32, #tpu.memory_space<vmem>>, vector<16x32xf32>,
      } else {
      }
    } else {
    }
    return
  }
  func.func @transform_0(%arg0: i32, %arg1: i32) -> (i32, i32) {
    %c1_i32 = arith.constant 1 : i32
    %0 = arith.subi %c1_i32, %arg0 : i32
    %c0_i32 = arith.constant 0 : i32
    %1 = arith.maxsi %0, %c0_i32 : i32
    %2 = arith.muli %arg1, %1 : i32
    %c0_i32_0 = arith.constant 0 : i32
    %c0_i32_1 = arith.constant 0 : i32
    return %2, %c0_i32_0 : i32, i32
  }
  func.func @transform_1(%arg0: i32, %arg1: i32) -> (i32, i32) {
    %c1_i32 = arith.constant 1 : i32
    %0 = arith.subi %c1_i32, %arg0 : i32
    %c0_i32 = arith.constant 0 : i32
    %1 = arith.maxsi %0, %c0_i32 : i32
    %2 = arith.muli %arg1, %1 : i32
    %c0_i32_0 = arith.constant 0 : i32
    %c0_i32_1 = arith.constant 0 : i32
    return %2, %c0_i32_0 : i32, i32
  }
  func.func @transform_2(%arg0: i32, %arg1: i32) -> (i32, i32) {
    %c1_i32 = arith.constant 1 : i32
    %0 = arith.subi %c1_i32, %arg0 : i32
    %c0_i32 = arith.constant 0 : i32
    %1 = arith.maxsi %0, %c0_i32 : i32
    %2 = arith.muli %arg1, %1 : i32
    %c0_i32_0 = arith.constant 0 : i32
    %c0_i32_1 = arith.constant 0 : i32
    return %2, %c0_i32_0 : i32, i32
  }
  func.func @transform_3(%arg0: i32, %arg1: i32) -> (i32, i32) {
    %c0_i32 = arith.constant 0 : i32
    %c0_i32_0 = arith.constant 0 : i32
    %c0_i32_1 = arith.constant 0 : i32
    return %c0_i32, %c0_i32_0 : i32, i32
  }
  func.func @transform_4(%arg0: i32, %arg1: i32) -> (i32, i32) {
    %c0_i32 = arith.constant 0 : i32
    %c0_i32_0 = arith.constant 0 : i32
    %c0_i32_1 = arith.constant 0 : i32
    return %c0_i32, %c0_i32_0 : i32, i32
  }
  func.func @transform_5(%arg0: i32, %arg1: i32) -> (i32, i32) {
    %c0_i32 = arith.constant 0 : i32
    %c0_i32_0 = arith.constant 0 : i32
    %c0_i32_1 = arith.constant 0 : i32
    return %c0_i32, %c0_i32_0 : i32, i32
  }
  func.func @transform_6(%arg0: i32, %arg1: i32) -> (i32, i32) {
    %c0_i32 = arith.constant 0 : i32
    %c0_i32_0 = arith.constant 0 : i32
    %c0_i32_1 = arith.constant 0 : i32
    return %c0_i32, %c0_i32_0 : i32, i32
  }
  func.func @transform_7(%arg0: i32, %arg1: i32) -> (i32, i32) {
    %c0_i32 = arith.constant 0 : i32
    %c0_i32_0 = arith.constant 0 : i32
    %c0_i32_1 = arith.constant 0 : i32
    return %c0_i32, %c0_i32_0 : i32, i32
  }
  func.func @transform_8(%arg0: i32, %arg1: i32) -> (i32, i32) {
    %c0_i32 = arith.constant 0 : i32
    %c0_i32_0 = arith.constant 0 : i32
    %c0_i32_1 = arith.constant 0 : i32
    return %c0_i32, %c0_i32_0 : i32, i32
  }
  func.func @transform_9(%arg0: i32, %arg1: i32) -> (i32, i32) {
    %c0_i32 = arith.constant 0 : i32
    %c0_i32_0 = arith.constant 0 : i32
    %c0_i32_1 = arith.constant 0 : i32
    return %c0_i32, %c0_i32_0 : i32, i32
  }
  func.func @transform_10(%arg0: i32, %arg1: i32) -> (i32, i32) {
    %c0_i32 = arith.constant 0 : i32
    %c0_i32_0 = arith.constant 0 : i32
    %c0_i32_1 = arith.constant 0 : i32
    return %c0_i32, %c0_i32_0 : i32, i32
  }
  func.func @transform_11(%arg0: i32, %arg1: i32) -> (i32, i32) {
    %c0_i32 = arith.constant 0 : i32
    %c0_i32_0 = arith.constant 0 : i32
    %c0_i32_1 = arith.constant 0 : i32
    return %c0_i32, %c0_i32_0 : i32, i32
  }
  func.func @transform_12(%arg0: i32, %arg1: i32) -> (i32, i32) {
    %c0_i32 = arith.constant 0 : i32
    %c0_i32_0 = arith.constant 0 : i32
    %c0_i32_1 = arith.constant 0 : i32
    return %c0_i32, %c0_i32_0 : i32, i32
  }
}

</mosaic_0001>

<bundles_post_ra>
// kernel: tpu_custom_call.1
= control target key start
LH: loop header
LB: loop body
LE: loop exit
PB: predicated region body
PF: predicated region fallthrough
CT: control target
= control target key end

     0   :  { %17 = vsyncpa [#allocation12], 0  ;;  %s3185_s21 = smov 0   ;;  %s3187_s22 = smov 0   ;;  %s3943_s0 = inlined_call_operand.vmem [shape: bf16[128,16], index: 0, kind: input, shape index: {}]   ;;  %s3944_s1 = inlined_call_operand.vmem [shape: s32[128,1], index: 1, kind: input, shape index: {}]   ;;  %s3945_s2 = inlined_call_operand.vmem [shape: s32[128,1], index: 2, kind: input, shape index: {}]   ;;  %s3946_s3 = inlined_call_operand.vmem [shape: f32[16,32], index: 3, kind: input, shape index: {}]   ;;  %s3947_s4 = inlined_call_operand.vmem [shape: f32[32,64], index: 4, kind: input, shape index: {}]   ;;  %s3948_s5 = inlined_call_operand.vmem [shape: f32[32,64], index: 5, kind: input, shape index: {}]   ;;  %s3949_s6 = inlined_call_operand.vmem [shape: bf16[16,64], index: 6, kind: input, shape index: {}]   ;;  %s3950_s7 = inlined_call_operand.vmem [shape: f32[1,64], index: 7, kind: input, shape index: {}]   ;;  %s3951_s8 = inlined_call_operand.vmem [shape: f32[1,64], index: 8, kind: input, shape index: {}]   ;;  %s3952_s9 = inlined_call_operand.vmem [shape: f32[1,64], index: 9, kind: input, shape index: {}]   ;;  %s3953_s10 = inlined_call_operand.vmem [shape: f32[1,32], index: 10, kind: input, shape index: {}]   ;;  %s3954_s11 = inlined_call_operand.vmem [shape: f32[1,32], index: 11, kind: input, shape index: {}]   ;;  %s3955_s12 = inlined_call_operand.hbm [shape: f32[16,32], index: 12, kind: output, shape index: {}]  }
   0x1   :  { %s3189_s23 = smov 0  }
   0x2 LB: > { %s2462_s24 = sadd.s32 4294967295, %s3110_s23   ;;  %s35_s25 = sadd.s32 1, %s3106_s22  ;;  %s3110_s23 = sphi %s3189_s23, %s23_s23   ;;  %s3106_s22 = sphi %s3187_s22, %s3988_s22   ;;  %s3102_s21 = sphi %s3185_s21, %s3987_s21  }
   0x3   : > { %p37_p0 = scmp.ge.s32.totalorder %s35_s25, 3  ;;  %p2468_p1 = scmp.ge.s32.totalorder %s3110_s23, 1 }
   0x4   : > { %p441_p2 = scmp.lt.s32.totalorder %s3110_s23, 4 }
   0x5   : > { %s3990_s25 = smov (%p37_p0, %s35_s25), 0 }
   0x6   : > { %p442_p3 = pnand %p2468_p1, %p441_p2 }
   0x7   : > { %p545_p4 = scmp.eq.s32.totalorder (!%p442_p3), %s3102_s21, 0 }
   0x8   : > { %445 = sbr.rel (%p442_p3) target bundleno = 1311 (0x51f), region = 68 }
   0xf   : > { %550 = sbr.rel (!%p545_p4) target bundleno = 242 (0xf2), region = 72  ;;  %v553_v0 = vld [vmem:[%s3947_s4] sm:$0xff] (%p545_p4)  ;;  %v554_v1 = vld [vmem:[%s3947_s4 + $0x8] sm:$0xff] (%p545_p4)  ;;  %vm564_vm0 = vcmask (%p545_p4), 261120   ;;  %v555_v5 = vld [vmem:[%s3947_s4 + $0x10] sm:$0xff] (%p545_p4)  ;;  %vm730_vm1 = vcmask (%p545_p4), 516096  }
  0x10   : > { %v649_v2 = vld [vmem:[%s3948_s5] sm:$0xff] (%p545_p4)  ;;  %v2795_v3 = vpack.c.bf16 (%p545_p4), %v554_v1, %v553_v0  ;;  %v650_v4 = vld [vmem:[%s3948_s5 + $0x8] sm:$0xff] (%p545_p4)  ;;  %v556_v6 = vld [vmem:[%s3947_s4 + $0x18] sm:$0xff] (%p545_p4)  ;;  %v3112_v14 = vmov (%p545_p4), 0.0   ;;  %vm646_vm2 = vcmask (%p545_p4), 523264  }
  0x11   : > { %v2803_v7 = vpack.c.bf16 (%p545_p4), %v650_v4, %v649_v2  ;;  %v2799_v8 = vpack.c.bf16 (%p545_p4), %v556_v6, %v555_v5  ;;  %v651_v9 = vld [vmem:[%s3948_s5 + $0x10] sm:$0xff] (%p545_p4)  ;;  %v652_v10 = vld [vmem:[%s3948_s5 + $0x18] sm:$0xff] (%p545_p4)  ;;  %v551_v11 = vld [vmem:[%s3946_s3] sm:$0xff] (%p545_p4)  ;;  %731 = vst.msk [vmem:[#allocation5] sm:$0x1] (%p545_p4), %vm730_vm1, %v3112_v14 }
  0x12   : > { %2796 = vmatprep.subr.bf16.mxu0 (%p545_p4), %v2795_v3  ;;  %v2807_v12 = vpack.c.bf16 (%p545_p4), %v652_v10, %v651_v9  ;;  %2672 = vmatprep.mubr.msk.f32.mxu0 (%p545_p4), %vm564_vm0, %v551_v11  ;;  %v552_v13 = vld [vmem:[%s3946_s3 + $0x8] sm:$0xff] (%p545_p4)  ;;  %732 = vst.msk [vmem:[#allocation6] sm:$0x1] (%p545_p4), %vm730_vm1, %v3112_v14  ;;  %v2470_v15 = vld [vmem:[%s3950_s7] ss:$0 sm:$0xff] (%p545_p4) }
  0x13   : > { %2798 = vmatpush3.bf16.msra.mxu0 (%p545_p4), %v2795_v3  ;;  %2804 = vmatprep.subr.bf16.mxu1 (%p545_p4), %v2803_v7 }
  0x14   : > { %2806 = vmatpush3.bf16.msra.mxu1 (%p545_p4), %v2803_v7  ;;  %2800 = vmatprep.subr.bf16.mxu0 (%p545_p4), %v2799_v8 }
  0x15   : > { %2808 = vmatprep.subr.bf16.mxu1 (%p545_p4), %v2807_v12  ;;  %2683 = vmatprep.mubr.msk.f32.mxu1 (%p545_p4), %vm564_vm0, %v551_v11 }
  0x17   : > { %2802 = vmatpush3.bf16.msra.mxu0 %v2799_v8 }
  0x18   : > { %2810 = vmatpush3.bf16.msra.mxu1 %v2807_v12 }
  0x1a   : > { %2673 = vmatmul.mubr.msk.f32.vlgmr.msra.gmra.mrb[0].mxu0 %vm564_vm0, %v552_v13 }
  0x1b   : > { %2684 = vmatmul.mubr.msk.f32.vlgmr.msra.gmra.mrb[0].mxu1 %vm564_vm0, %v552_v13 }
  0xed   : > { %v2674_v16 = vpop.f32.mrb[0].mxu0 }
  0xee   : > { %v643_v17 = vadd.f32 %v2674_v16, %v2470_v15  ;;  %v637_v18 = vpop.f32.mrb[1].mxu0  ;;  %v2685_v19 = vpop.f32.mrb[0].mxu1 }
  0xef   : > { %v638_v20 = vadd.f32 %v2470_v15, %v637_v18  ;;  %729 = vst.msk [vmem:[#allocation3 + $0x8] sm:$0xff] %vm646_vm2, %v2685_v19  ;;  %v719_v21 = vpop.f32.mrb[1].mxu1 }
  0xf0   : > { %648 = vst.msk [vmem:[#allocation2 + $0x8] sm:$0xff] %vm646_vm2, %v643_v17  ;;  %728 = vst.msk [vmem:[#allocation3] sm:$0xff] %vm646_vm2, %v719_v21 }
  0xf1   : > { %647 = vst.msk [vmem:[#allocation2] sm:$0xff] %vm646_vm2, %v638_v20 }
  0xf2 PF: > { %p2475_p5 = scmp.ne.s32.totalorder %s3102_s21, 0 }
  0xf3   : > { %v858_v22 = vld [vmem:[%s3945_s2 + $0x40] sm:$0xff] (!%p2475_p5)  ;;  %v3113_v24 = vmov (!%p2475_p5), 0   ;;  %v859_v25 = vld [vmem:[%s3945_s2 + $0x48] sm:$0xff] (!%p2475_p5)  ;;  %v853_v27 = vld [vmem:[%s3945_s2 + $0x18] sm:$0xff] (!%p2475_p5)  ;;  %v736_v62 = vlaneseq (!%p2475_p5)  ;;  %vm966_vm3 = vcmask (!%p2475_p5), 130048   ;;  %v3114_v2 = vmov (!%p2475_p5), 0.0  }
  0xf4   : > { %735 = sbr.rel (%p2475_p5) target bundleno = 673 (0x2a1), region = 76  ;;  %v850_v23 = vld [vmem:[%s3945_s2] sm:$0xff] (!%p2475_p5)  ;;  %2908 = vset.pattern.permute.xlu1 (!%p2475_p5), %v3113_v24  ;;  %2907 = vset.pattern.permute.xlu0 (!%p2475_p5), %v3113_v24  ;;  %v851_v26 = vld [vmem:[%s3945_s2 + $0x8] sm:$0xff] (!%p2475_p5)  ;;  %v852_v28 = vld [vmem:[%s3945_s2 + $0x10] sm:$0xff] (!%p2475_p5) }
  0xf5   : > { %891 = vperm.xlu1 (!%p2475_p5), %2908, %v858_v22   ;;  %867 = vperm.xlu0 (!%p2475_p5), %2907, %v850_v23   ;;  %v861_v29 = vld [vmem:[%s3945_s2 + $0x58] sm:$0xff] (!%p2475_p5)  ;;  %v860_v30 = vld [vmem:[%s3945_s2 + $0x50] sm:$0xff] (!%p2475_p5)  ;;  %v855_v34 = vld [vmem:[%s3945_s2 + $0x28] sm:$0xff] (!%p2475_p5)  ;;  %v3347_v63 = vand.u32 (!%p2475_p5), 127, %v736_v62 }
  0xf6   : > { %v965_v32 = vld [vmem:[#allocation3 + $0x8] sm:$0xff] (!%p2475_p5)  ;;  %v854_v35 = vld [vmem:[%s3945_s2 + $0x20] sm:$0xff] (!%p2475_p5)  ;;  %v863_v36 = vld [vmem:[%s3945_s2 + $0x68] sm:$0xff] (!%p2475_p5) }
  0xf7   : > { %v964_v31 = vld [vmem:[#allocation3] sm:$0xff] (!%p2475_p5)  ;;  %v862_v37 = vld [vmem:[%s3945_s2 + $0x60] sm:$0xff] (!%p2475_p5)  ;;  %v963_v39 = vld [vmem:[#allocation2 + $0x8] sm:$0xff] (!%p2475_p5) }
  0xf8   : > { %v2811_v33 = vpack.c.bf16 (!%p2475_p5), %v965_v32, %v964_v31  ;;  %v962_v38 = vld [vmem:[#allocation2] sm:$0xff] (!%p2475_p5)  ;;  %v857_v41 = vld [vmem:[%s3945_s2 + $0x38] sm:$0xff] (!%p2475_p5)  ;;  %v856_v42 = vld [vmem:[%s3945_s2 + $0x30] sm:$0xff] (!%p2475_p5) }
  0xf9   : > { %894 = vperm.xlu1 (!%p2475_p5), %2908, %v859_v25   ;;  %870 = vperm.xlu0 (!%p2475_p5), %2907, %v851_v26   ;;  %v3281_v40 = vpack.c.bf16 (!%p2475_p5), %v963_v39, %v962_v38  ;;  %v2909_v43 = vld [vmem:[%s3949_s6] sm:$0xff] (!%p2475_p5)   ;;  %v865_v44 = vld [vmem:[%s3945_s2 + $0x78] sm:$0xff] (!%p2475_p5)  ;;  %v864_v45 = vld [vmem:[%s3945_s2 + $0x70] sm:$0xff] (!%p2475_p5) }
  0xfa   : > { %2812 = vmatprep.subr.bf16.mxu0 (!%p2475_p5), %v2811_v33  ;;  %2851 = vmatprep.subr.bf16.mxu1 (!%p2475_p5), %v2811_v33  ;;  %v739_v46 = vld [vmem:[%s3944_s1 + $0x8] sm:$0xff] (!%p2475_p5)  ;;  %v738_v47 = vld [vmem:[%s3944_s1] sm:$0xff] (!%p2475_p5)  ;;  %v741_v48 = vld [vmem:[%s3944_s1 + $0x18] sm:$0xff] (!%p2475_p5) }
  0xfb   : > { %2814 = vmatpush3.bf16.msra.mxu0 %v2811_v33  ;;  %2852 = vmatpush3.bf16.msra.mxu1 %v2811_v33  ;;  %v740_v49 = vld [vmem:[%s3944_s1 + $0x10] sm:$0xff]  ;;  %v743_v50 = vld [vmem:[%s3944_s1 + $0x28] sm:$0xff]  ;;  %v742_v51 = vld [vmem:[%s3944_s1 + $0x20] sm:$0xff] }
  0xfc   : > { %2816 = vmatprep.subr.bf16.mxu0 %v3281_v40  ;;  %2742 = vmatprep.subr.bf16.mxu1 %v2909_v43  ;;  %v745_v52 = vld [vmem:[%s3944_s1 + $0x38] sm:$0xff]  ;;  %v744_v53 = vld [vmem:[%s3944_s1 + $0x30] sm:$0xff]  ;;  %v747_v54 = vld [vmem:[%s3944_s1 + $0x48] sm:$0xff] }
  0xfd   : > { %876 = vperm.xlu1 %2908, %v853_v27   ;;  %873 = vperm.xlu0 %2907, %v852_v28   ;;  %v746_v55 = vld [vmem:[%s3944_s1 + $0x40] sm:$0xff]  ;;  %v749_v56 = vld [vmem:[%s3944_s1 + $0x58] sm:$0xff]  ;;  %v748_v57 = vld [vmem:[%s3944_s1 + $0x50] sm:$0xff] }
  0xfe   : > { %v751_v58 = vld [vmem:[%s3944_s1 + $0x68] sm:$0xff]  ;;  %v750_v59 = vld [vmem:[%s3944_s1 + $0x60] sm:$0xff]  ;;  %v753_v60 = vld [vmem:[%s3944_s1 + $0x78] sm:$0xff] }
  0xff   : > { %v752_v61 = vld [vmem:[%s3944_s1 + $0x70] sm:$0xff]  ;;  %v2910_v31 = vld [vmem:[%s3943_s0] sm:$0xff]  }
 0x101   : > { %900 = vperm.xlu1 %2908, %v861_v29   ;;  %897 = vperm.xlu0 %2907, %v860_v30  }
 0x105   : > { %882 = vperm.xlu1 %2908, %v855_v34   ;;  %879 = vperm.xlu0 %2907, %v854_v35  }
 0x109   : > { %906 = vperm.xlu1 %2908, %v863_v36   ;;  %903 = vperm.xlu0 %2907, %v862_v37   ;;  %v2911_v36 = vld [vmem:[%s3943_s0 + $0x8] sm:$0xff]   ;;  %v2912_v37 = vld [vmem:[%s3943_s0 + $0x10] sm:$0xff]  }
 0x10d   : > { %888 = vperm.xlu1 %2908, %v857_v41   ;;  %885 = vperm.xlu0 %2907, %v856_v42  }
 0x111   : > { %912 = vperm.xlu1 %2908, %v865_v44   ;;  %909 = vperm.xlu0 %2907, %v864_v45  }
 0x115   : > { %758 = vperm.xlu1 %2908, %v739_v46   ;;  %755 = vperm.xlu0 %2907, %v738_v47   ;;  %v2913_v46 = vld [vmem:[%s3943_s0 + $0x18] sm:$0xff]   ;;  %v2914_v47 = vld [vmem:[%s3943_s0 + $0x20] sm:$0xff]  }
 0x119   : > { %764 = vperm.xlu1 %2908, %v741_v48   ;;  %761 = vperm.xlu0 %2907, %v740_v49  }
 0x11d   : > { %770 = vperm.xlu1 %2908, %v743_v50   ;;  %767 = vperm.xlu0 %2907, %v742_v51  }
 0x121   : > { %776 = vperm.xlu1 %2908, %v745_v52   ;;  %773 = vperm.xlu0 %2907, %v744_v53  }
 0x125   : > { %782 = vperm.xlu1 %2908, %v747_v54   ;;  %779 = vperm.xlu0 %2907, %v746_v55  }
 0x129   : > { %788 = vperm.xlu1 %2908, %v749_v56   ;;  %785 = vperm.xlu0 %2907, %v748_v57   ;;  %v2915_v56 = vld [vmem:[%s3943_s0 + $0x28] sm:$0xff]   ;;  %v2916_v57 = vld [vmem:[%s3943_s0 + $0x30] sm:$0xff]  }
 0x12d   : > { %794 = vperm.xlu1 %2908, %v751_v58   ;;  %791 = vperm.xlu0 %2907, %v750_v59  }
 0x131   : > { %800 = vperm.xlu1 %2908, %v753_v60   ;;  %797 = vperm.xlu0 %2907, %v752_v61  }
 0x174   : > { %v892_v0 = vpop.permute.xlu1 %891  ;;  %v868_v1 = vpop.permute.xlu0 %867 }
 0x175   : > { %vm922_vm4 = vcmp.eq.s32.totalorder %v3347_v63, %v892_v0  ;;  %vm914_vm5 = vcmp.eq.s32.totalorder %v3347_v63, %v868_v1 }
 0x176   : > { %v2492_v3 = vsel %vm914_vm5, 1.0, %v3114_v2  ;;  %v2500_v4 = vsel %vm922_vm4, 1.0, %v3114_v2 }
 0x177   : > { %2690 = vmatprep.mubr.msk.f32.mxu0 %vm966_vm3, %v2492_v3  ;;  %2702 = vmatprep.mubr.msk.f32.mxu1 %vm966_vm3, %v2500_v4  ;;  %v2917_v4 = vld [vmem:[%s3943_s0 + $0x38] sm:$0xff]  }
 0x178   : > { %v895_v5 = vpop.permute.xlu1 %894  ;;  %v871_v6 = vpop.permute.xlu0 %870 }
 0x179   : > { %vm923_vm6 = vcmp.eq.s32.totalorder %v3347_v63, %v895_v5  ;;  %vm915_vm7 = vcmp.eq.s32.totalorder %v3347_v63, %v871_v6 }
 0x17a   : > { %v2501_v7 = vsel %vm923_vm6, 1.0, %v3114_v2  ;;  %v2493_v8 = vsel %vm915_vm7, 1.0, %v3114_v2 }
 0x17b   : > { %2691 = vmatmul.mubr.msk.f32.vlgmr.msra.gmra.mrb[0].mxu0 %vm966_vm3, %v2493_v8  ;;  %2703 = vmatmul.mubr.msk.f32.vlgmr.msra.gmra.mrb[0].mxu1 %vm966_vm3, %v2501_v7 }
 0x17c   : > { %v877_v9 = vpop.permute.xlu1 %876  ;;  %v874_v10 = vpop.permute.xlu0 %873  ;;  %2818 = vmatpush3.bf16.msra.mxu0 %v3281_v40  ;;  %2743 = vmatpush3.bf16.msra.mxu1 %v2909_v43 }
 0x17d   : > { %vm917_vm8 = vcmp.eq.s32.totalorder %v3347_v63, %v877_v9  ;;  %vm916_vm9 = vcmp.eq.s32.totalorder %v3347_v63, %v874_v10 }
 0x17e   : > { %v2495_v11 = vsel %vm917_vm8, 1.0, %v3114_v2  ;;  %v2494_v12 = vsel %vm916_vm9, 1.0, %v3114_v2 }
 0x17f   : > { %2693 = vmatprep.mubr.msk.f32.mxu0 %vm966_vm3, %v2494_v12 }
 0x180   : > { %v901_v13 = vpop.permute.xlu1 %900  ;;  %v898_v14 = vpop.permute.xlu0 %897  ;;  %2694 = vmatmul.mubr.msk.f32.gmra.mrb[2].mxu0 %vm966_vm3, %v2495_v11 }
 0x181   : > { %vm925_vm10 = vcmp.eq.s32.totalorder %v3347_v63, %v901_v13  ;;  %vm924_vm11 = vcmp.eq.s32.totalorder %v3347_v63, %v898_v14 }
 0x182   : > { %v2503_v15 = vsel %vm925_vm10, 1.0, %v3114_v2  ;;  %v2502_v16 = vsel %vm924_vm11, 1.0, %v3114_v2 }
 0x183   : > { %2705 = vmatprep.mubr.msk.f32.mxu1 %vm966_vm3, %v2502_v16 }
 0x184   : > { %v883_v17 = vpop.permute.xlu1 %882  ;;  %v880_v18 = vpop.permute.xlu0 %879  ;;  %2706 = vmatmul.mubr.msk.f32.gmra.mrb[2].mxu1 %vm966_vm3, %v2503_v15 }
 0x185   : > { %vm919_vm12 = vcmp.eq.s32.totalorder %v3347_v63, %v883_v17  ;;  %vm918_vm13 = vcmp.eq.s32.totalorder %v3347_v63, %v880_v18 }
 0x186   : > { %v2497_v19 = vsel %vm919_vm12, 1.0, %v3114_v2  ;;  %v2496_v20 = vsel %vm918_vm13, 1.0, %v3114_v2 }
 0x187   : > { %2696 = vmatprep.mubr.msk.f32.mxu0 %vm966_vm3, %v2496_v20 }
 0x188   : > { %v907_v21 = vpop.permute.xlu1 %906  ;;  %v904_v22 = vpop.permute.xlu0 %903  ;;  %2697 = vmatmul.mubr.msk.f32.gmra.mrb[4].mxu0 %vm966_vm3, %v2497_v19 }
 0x189   : > { %vm927_vm14 = vcmp.eq.s32.totalorder %v3347_v63, %v907_v21  ;;  %vm926_vm15 = vcmp.eq.s32.totalorder %v3347_v63, %v904_v22 }
 0x18a   : > { %v2505_v23 = vsel %vm927_vm14, 1.0, %v3114_v2  ;;  %v2504_v24 = vsel %vm926_vm15, 1.0, %v3114_v2 }
 0x18b   : > { %2708 = vmatprep.mubr.msk.f32.mxu1 %vm966_vm3, %v2504_v24 }
 0x18c   : > { %v889_v25 = vpop.permute.xlu1 %888  ;;  %v886_v26 = vpop.permute.xlu0 %885  ;;  %2709 = vmatmul.mubr.msk.f32.gmra.mrb[4].mxu1 %vm966_vm3, %v2505_v23 }
 0x18d   : > { %vm921_vm0 = vcmp.eq.s32.totalorder %v3347_v63, %v889_v25  ;;  %vm920_vm1 = vcmp.eq.s32.totalorder %v3347_v63, %v886_v26 }
 0x18e   : > { %v2499_v27 = vsel %vm921_vm0, 1.0, %v3114_v2  ;;  %v2498_v28 = vsel %vm920_vm1, 1.0, %v3114_v2 }
 0x18f   : > { %2699 = vmatprep.mubr.msk.f32.mxu0 %vm966_vm3, %v2498_v28 }
 0x190   : > { %v913_v29 = vpop.permute.xlu1 %912  ;;  %v910_v30 = vpop.permute.xlu0 %909  ;;  %2700 = vmatmul.mubr.msk.f32.gmra.mrb[6].mxu0 %vm966_vm3, %v2499_v27 }
 0x191   : > { %vm929_vm2 = vcmp.eq.s32.totalorder %v3347_v63, %v913_v29  ;;  %vm928_vm4 = vcmp.eq.s32.totalorder %v3347_v63, %v910_v30 }
 0x192   : > { %v2507_v32 = vsel %vm929_vm2, 1.0, %v3114_v2  ;;  %v2506_v33 = vsel %vm928_vm4, 1.0, %v3114_v2 }
 0x193   : > { %2711 = vmatprep.mubr.msk.f32.mxu1 %vm966_vm3, %v2506_v33 }
 0x194   : > { %v759_v34 = vpop.permute.xlu1 %758  ;;  %v756_v35 = vpop.permute.xlu0 %755  ;;  %2712 = vmatmul.mubr.msk.f32.gmra.mrb[6].mxu1 %vm966_vm3, %v2507_v32 }
 0x195   : > { %vm803_vm5 = vcmp.eq.s32.totalorder %v3347_v63, %v759_v34  ;;  %vm802_vm6 = vcmp.eq.s32.totalorder %v3347_v63, %v756_v35  ;;  %2744 = vmatprep.mubr.msk.bf16.mxu1 %vm966_vm3, %v2910_v31 }
 0x196   : > { %v2477_v38 = vsel %vm803_vm5, 1.0, %v3114_v2  ;;  %v2476_v39 = vsel %vm802_vm6, 1.0, %v3114_v2  ;;  %vm1555_vm6 = vcmask 523264  }
 0x197   : > { %2718 = vmatprep.mubr.msk.f32.mxu0 %vm966_vm3, %v2476_v39 }
 0x198   : > { %v765_v40 = vpop.permute.xlu1 %764  ;;  %v762_v41 = vpop.permute.xlu0 %761  ;;  %2719 = vmatmul.mubr.msk.f32.vlgmr.msra.gmra.mrb[0].mxu0 %vm966_vm3, %v2477_v38  ;;  %2745 = vmatmul.mubr.msk.bf16.vlgmr.msra.gmra.mrb[8].mxu1 %vm966_vm3, %v2911_v36 }
 0x199   : > { %vm805_vm7 = vcmp.eq.s32.totalorder %v3347_v63, %v765_v40  ;;  %vm804_vm8 = vcmp.eq.s32.totalorder %v3347_v63, %v762_v41  ;;  %2748 = vmatprep.mubr.msk.bf16.mxu1 %vm966_vm3, %v2912_v37 }
 0x19a   : > { %v2479_v42 = vsel %vm805_vm7, 1.0, %v3114_v2  ;;  %v2478_v43 = vsel %vm804_vm8, 1.0, %v3114_v2 }
 0x19b   : > { %2721 = vmatprep.mubr.msk.f32.mxu0 %vm966_vm3, %v2478_v43 }
 0x19c   : > { %v771_v44 = vpop.permute.xlu1 %770  ;;  %v768_v45 = vpop.permute.xlu0 %767  ;;  %2722 = vmatmul.mubr.msk.f32.gmra.mrb[2].mxu0 %vm966_vm3, %v2479_v42 }
 0x19d   : > { %vm807_vm9 = vcmp.eq.s32.totalorder %v3347_v63, %v771_v44  ;;  %vm806_vm10 = vcmp.eq.s32.totalorder %v3347_v63, %v768_v45 }
 0x19e   : > { %v2481_v48 = vsel %vm807_vm9, 1.0, %v3114_v2  ;;  %v2480_v49 = vsel %vm806_vm10, 1.0, %v3114_v2 }
 0x19f   : > { %2724 = vmatprep.mubr.msk.f32.mxu0 %vm966_vm3, %v2480_v49 }
 0x1a0   : > { %v777_v50 = vpop.permute.xlu1 %776  ;;  %v774_v51 = vpop.permute.xlu0 %773  ;;  %2725 = vmatmul.mubr.msk.f32.gmra.mrb[4].mxu0 %vm966_vm3, %v2481_v48  ;;  %2749 = vmatmul.mubr.msk.bf16.gmra.mrb[12].mxu1 %vm966_vm3, %v2913_v46 }
 0x1a1   : > { %vm809_vm11 = vcmp.eq.s32.totalorder %v3347_v63, %v777_v50  ;;  %vm808_vm12 = vcmp.eq.s32.totalorder %v3347_v63, %v774_v51  ;;  %2752 = vmatprep.mubr.msk.bf16.mxu1 %vm966_vm3, %v2914_v47 }
 0x1a2   : > { %v2483_v52 = vsel %vm809_vm11, 1.0, %v3114_v2  ;;  %v2482_v53 = vsel %vm808_vm12, 1.0, %v3114_v2 }
 0x1a3   : > { %2727 = vmatprep.mubr.msk.f32.mxu0 %vm966_vm3, %v2482_v53 }
 0x1a4   : > { %v783_v54 = vpop.permute.xlu1 %782  ;;  %v780_v55 = vpop.permute.xlu0 %779  ;;  %2728 = vmatmul.mubr.msk.f32.gmra.mrb[6].mxu0 %vm966_vm3, %v2483_v52 }
 0x1a5   : > { %vm811_vm13 = vcmp.eq.s32.totalorder %v3347_v63, %v783_v54  ;;  %vm810_vm14 = vcmp.eq.s32.totalorder %v3347_v63, %v780_v55 }
 0x1a6   : > { %v2485_v58 = vsel %vm811_vm13, 1.0, %v3114_v2  ;;  %v2484_v59 = vsel %vm810_vm14, 1.0, %v3114_v2 }
 0x1a7   : > { %2730 = vmatprep.mubr.msk.f32.mxu0 %vm966_vm3, %v2484_v59 }
 0x1a8   : > { %v789_v60 = vpop.permute.xlu1 %788  ;;  %v786_v61 = vpop.permute.xlu0 %785  ;;  %2731 = vmatmul.mubr.msk.f32.gmra.mrb[8].mxu0 %vm966_vm3, %v2485_v58  ;;  %2753 = vmatmul.mubr.msk.bf16.gmra.mrb[16].mxu1 %vm966_vm3, %v2915_v56 }
 0x1a9   : > { %vm813_vm15 = vcmp.eq.s32.totalorder %v3347_v63, %v789_v60  ;;  %vm812_vm0 = vcmp.eq.s32.totalorder %v3347_v63, %v786_v61  ;;  %2756 = vmatprep.mubr.msk.bf16.mxu1 %vm966_vm3, %v2916_v57 }
 0x1aa   : > { %v2487_v62 = vsel %vm813_vm15, 1.0, %v3114_v2  ;;  %v2486_v0 = vsel %vm812_vm0, 1.0, %v3114_v2 }
 0x1ab   : > { %2733 = vmatprep.mubr.msk.f32.mxu0 %vm966_vm3, %v2486_v0 }
 0x1ac   : > { %v795_v1 = vpop.permute.xlu1 %794  ;;  %v792_v3 = vpop.permute.xlu0 %791  ;;  %2734 = vmatmul.mubr.msk.f32.gmra.mrb[10].mxu0 %vm966_vm3, %v2487_v62 }
 0x1ad   : > { %vm815_vm1 = vcmp.eq.s32.totalorder %v3347_v63, %v795_v1  ;;  %vm814_vm2 = vcmp.eq.s32.totalorder %v3347_v63, %v792_v3 }
 0x1ae   : > { %v2489_v5 = vsel %vm815_vm1, 1.0, %v3114_v2  ;;  %v2488_v6 = vsel %vm814_vm2, 1.0, %v3114_v2 }
 0x1af   : > { %2736 = vmatprep.mubr.msk.f32.mxu0 %vm966_vm3, %v2488_v6 }
 0x1b0   : > { %v801_v7 = vpop.permute.xlu1 %800  ;;  %v798_v8 = vpop.permute.xlu0 %797  ;;  %2737 = vmatmul.mubr.msk.f32.gmra.mrb[12].mxu0 %vm966_vm3, %v2489_v5  ;;  %2757 = vmatmul.mubr.msk.bf16.gmra.mrb[20].mxu1 %vm966_vm3, %v2917_v4 }
 0x1b1   : > { %vm817_vm4 = vcmp.eq.s32.totalorder %v3347_v63, %v801_v7  ;;  %vm816_vm5 = vcmp.eq.s32.totalorder %v3347_v63, %v798_v8 }
 0x1b2   : > { %v2491_v9 = vsel %vm817_vm4, 1.0, %v3114_v2  ;;  %v2490_v10 = vsel %vm816_vm5, 1.0, %v3114_v2 }
 0x1b3   : > { %2739 = vmatprep.mubr.msk.f32.mxu0 %vm966_vm3, %v2490_v10 }
 0x1b4   : > { %2740 = vmatmul.mubr.msk.f32.gmra.mrb[14].mxu0 %vm966_vm3, %v2491_v9  ;;  %vm1611_vm3 = vcmask 516096  }
 0x24e   : > { %v2704_v11 = vpop.f32.mrb[0].mxu1 }
 0x24f   : > { %v1121_v12 = vpop.f32.mrb[1].mxu1 }
 0x257   : > { %v3478_v13 = vpop.f32.mrb[2].mxu1 }
 0x258   : > { %v3480_v14 = vpop.f32.mrb[3].mxu1 }
 0x25f   : > { %v3482_v15 = vpop.f32.mrb[4].mxu1 }
 0x260   : > { %v3484_v16 = vpop.f32.mrb[5].mxu1 }
 0x267   : > { %v3486_v17 = vpop.f32.mrb[6].mxu1 }
 0x268   : > { %v3488_v63 = vpop.f32.mrb[7].mxu1 }
 0x26b   : > { %v2720_v18 = vpop.f32.mrb[0].mxu0  ;;  %v2746_v2 = vpop.f32.mrb[8].mxu1 }
 0x26c   : > { %v1274_v19 = vpop.f32.mrb[1].mxu0  ;;  %v1475_v20 = vpop.f32.mrb[9].mxu1 }
 0x26d   : > { %v1538_v21 = vadd.f32 %v1475_v20, %v1274_v19  ;;  %v2747_v22 = vpop.f32.mrb[10].mxu1 }
 0x26e   : > { %v1478_v23 = vpop.f32.mrb[11].mxu1 }
 0x26f   : > { %1556 = vst.msk [vmem:[#allocation4] sm:$0xff] %vm1555_vm6, %v1538_v21  ;;  %v1539_v24 = vadd.f32 %v2720_v18, %v1478_v23  ;;  %v2723_v25 = vpop.f32.mrb[2].mxu0  ;;  %v1573_v28 = vsel %vm1555_vm6, %v1538_v21, 0.0 }
 0x270   : > { %v1541_v26 = vadd.f32 %v2747_v22, %v2723_v25  ;;  %v1284_v27 = vpop.f32.mrb[3].mxu0 }
 0x271   : > { %1557 = vst.msk [vmem:[#allocation4 + $0x8] sm:$0xff] %vm1555_vm6, %v1539_v24  ;;  %v1574_v29 = vsel %vm1555_vm6, %v1539_v24, 0.0  ;;  %v1540_v30 = vadd.f32 %v2746_v2, %v1284_v27 }
 0x272   : > { %v1575_v31 = vadd.f32 %v1574_v29, %v1573_v28  ;;  %1559 = vst.msk [vmem:[#allocation4 + $0x18] sm:$0xff] %vm1555_vm6, %v1541_v26  ;;  %v1578_v38 = vsel %vm1555_vm6, %v1541_v26, 0.0 }
 0x273   : > { %1558 = vst.msk [vmem:[#allocation4 + $0x10] sm:$0xff] %vm1555_vm6, %v1540_v30  ;;  %v1576_v32 = vsel %vm1555_vm6, %v1540_v30, 0.0  ;;  %v2726_v33 = vpop.f32.mrb[4].mxu0  ;;  %v2750_v34 = vpop.f32.mrb[12].mxu1 }
 0x274   : > { %v1577_v35 = vadd.f32 %v1576_v32, %v1575_v31  ;;  %v1294_v36 = vpop.f32.mrb[5].mxu0  ;;  %v1491_v37 = vpop.f32.mrb[13].mxu1 }
 0x275   : > { %v1542_v39 = vadd.f32 %v1491_v37, %v1294_v36  ;;  %v2751_v40 = vpop.f32.mrb[14].mxu1 }
 0x276   : > { %v1579_v41 = vadd.f32 %v1578_v38, %v1577_v35  ;;  %v1494_v42 = vpop.f32.mrb[15].mxu1 }
 0x277   : > { %1560 = vst.msk [vmem:[#allocation4 + $0x20] sm:$0xff] %vm1555_vm6, %v1542_v39  ;;  %v1580_v43 = vsel %vm1555_vm6, %v1542_v39, 0.0  ;;  %v1543_v44 = vadd.f32 %v2726_v33, %v1494_v42  ;;  %v2729_v45 = vpop.f32.mrb[6].mxu0 }
 0x278   : > { %v1581_v46 = vadd.f32 %v1580_v43, %v1579_v41  ;;  %v1545_v47 = vadd.f32 %v2751_v40, %v2729_v45  ;;  %v1304_v48 = vpop.f32.mrb[7].mxu0  ;;  %v1572_v45 = vld [vmem:[#allocation5] sm:$0x1] }
 0x279   : > { %1561 = vst.msk [vmem:[#allocation4 + $0x28] sm:$0xff] %vm1555_vm6, %v1543_v44  ;;  %v1582_v49 = vsel %vm1555_vm6, %v1543_v44, 0.0  ;;  %v1544_v50 = vadd.f32 %v2750_v34, %v1304_v48 }
 0x27a   : > { %v1583_v51 = vadd.f32 %v1582_v49, %v1581_v46  ;;  %1563 = vst.msk [vmem:[#allocation4 + $0x38] sm:$0xff] %vm1555_vm6, %v1545_v47  ;;  %v1586_v59 = vsel %vm1555_vm6, %v1545_v47, 0.0 }
 0x27b   : > { %1562 = vst.msk [vmem:[#allocation4 + $0x30] sm:$0xff] %vm1555_vm6, %v1544_v50  ;;  %v1584_v52 = vsel %vm1555_vm6, %v1544_v50, 0.0  ;;  %v2732_v53 = vpop.f32.mrb[8].mxu0  ;;  %v2754_v54 = vpop.f32.mrb[16].mxu1 }
 0x27c   : > { %v1585_v55 = vadd.f32 %v1584_v52, %v1583_v51  ;;  %v1320_v56 = vadd.f32 %v2732_v53, %v2704_v11  ;;  %v1314_v57 = vpop.f32.mrb[9].mxu0  ;;  %v1507_v58 = vpop.f32.mrb[17].mxu1 }
 0x27d   : > { %v1315_v60 = vadd.f32 %v1314_v57, %v1121_v12  ;;  %v2755_v61 = vpop.f32.mrb[18].mxu1 }
 0x27e   : > { %v1587_v62 = vadd.f32 %v1586_v59, %v1585_v55  ;;  %v1510_v0 = vpop.f32.mrb[19].mxu1 }
 0x27f   : > { %v1546_v1 = vadd.f32 %v1507_v58, %v1315_v60  ;;  %v1547_v3 = vadd.f32 %v1510_v0, %v1320_v56  ;;  %v2735_v4 = vpop.f32.mrb[10].mxu0 }
 0x280   : > { %v1330_v5 = vadd.f32 %v2735_v4, %v3478_v13  ;;  %v1324_v6 = vpop.f32.mrb[11].mxu0 }
 0x281   : > { %1564 = vst.msk [vmem:[#allocation4 + $0x40] sm:$0xff] %vm1555_vm6, %v1546_v1  ;;  %v1588_v7 = vsel %vm1555_vm6, %v1546_v1, 0.0  ;;  %1565 = vst.msk [vmem:[#allocation4 + $0x48] sm:$0xff] %vm1555_vm6, %v1547_v3  ;;  %v1325_v8 = vadd.f32 %v1324_v6, %v3480_v14  ;;  %v1590_v11 = vsel %vm1555_vm6, %v1547_v3, 0.0 }
 0x282   : > { %v1589_v9 = vadd.f32 %v1588_v7, %v1587_v62  ;;  %v1549_v10 = vadd.f32 %v2755_v61, %v1330_v5 }
 0x283   : > { %v1548_v12 = vadd.f32 %v2754_v54, %v1325_v8  ;;  %v2738_v18 = vpop.f32.mrb[12].mxu0  ;;  %v2758_v2 = vpop.f32.mrb[20].mxu1 }
 0x284   : > { %v1591_v19 = vadd.f32 %v1590_v11, %v1589_v9  ;;  %1567 = vst.msk [vmem:[#allocation4 + $0x58] sm:$0xff] %vm1555_vm6, %v1549_v10  ;;  %v1340_v13 = vadd.f32 %v2738_v18, %v3482_v15  ;;  %v1334_v20 = vpop.f32.mrb[13].mxu0  ;;  %v1523_v21 = vpop.f32.mrb[21].mxu1  ;;  %v1594_v26 = vsel %vm1555_vm6, %v1549_v10, 0.0 }
 0x285   : > { %1566 = vst.msk [vmem:[#allocation4 + $0x50] sm:$0xff] %vm1555_vm6, %v1548_v12  ;;  %v1592_v22 = vsel %vm1555_vm6, %v1548_v12, 0.0  ;;  %v1335_v14 = vadd.f32 %v1334_v20, %v3484_v16  ;;  %v2759_v23 = vpop.f32.mrb[22].mxu1 }
 0x286   : > { %v1593_v24 = vadd.f32 %v1592_v22, %v1591_v19  ;;  %v1526_v25 = vpop.f32.mrb[23].mxu1 }
 0x287   : > { %v1550_v27 = vadd.f32 %v1523_v21, %v1335_v14  ;;  %v1551_v28 = vadd.f32 %v1526_v25, %v1340_v13  ;;  %v2741_v29 = vpop.f32.mrb[14].mxu0 }
 0x288   : > { %v1595_v30 = vadd.f32 %v1594_v26, %v1593_v24  ;;  %v1350_v31 = vadd.f32 %v2741_v29, %v3486_v17  ;;  %v1344_v15 = vpop.f32.mrb[15].mxu0 }
 0x289   : > { %1568 = vst.msk [vmem:[#allocation4 + $0x60] sm:$0xff] %vm1555_vm6, %v1550_v27  ;;  %v1596_v32 = vsel %vm1555_vm6, %v1550_v27, 0.0  ;;  %1569 = vst.msk [vmem:[#allocation4 + $0x68] sm:$0xff] %vm1555_vm6, %v1551_v28  ;;  %v1345_v16 = vadd.f32 %v1344_v15, %v3488_v63  ;;  %v1598_v35 = vsel %vm1555_vm6, %v1551_v28, 0.0 }
 0x28a   : > { %v1597_v33 = vadd.f32 %v1596_v32, %v1595_v30  ;;  %v1553_v34 = vadd.f32 %v2759_v23, %v1350_v31 }
 0x28b   : > { %v1552_v36 = vadd.f32 %v2758_v2, %v1345_v16 }
 0x28c   : > { %v1599_v37 = vadd.f32 %v1598_v35, %v1597_v33  ;;  %1571 = vst.msk [vmem:[#allocation4 + $0x78] sm:$0xff] %vm1555_vm6, %v1553_v34  ;;  %v1602_v39 = vsel %vm1555_vm6, %v1553_v34, 0.0 }
 0x28d   : > { %1570 = vst.msk [vmem:[#allocation4 + $0x70] sm:$0xff] %vm1555_vm6, %v1552_v36  ;;  %v1600_v17 = vsel %vm1555_vm6, %v1552_v36, 0.0 }
 0x28e   : > { %v1601_v38 = vadd.f32 %v1600_v17, %v1599_v37 }
 0x290   : > { %v1603_v40 = vadd.f32 %v1602_v39, %v1601_v38 }
 0x292   : > { %v1604_v41 = vrot.slane %v1603_v40, 4 }
 0x294   : > { %v1605_v42 = vadd.f32 %v1604_v41, %v1603_v40 }
 0x296   : > { %v1606_v43 = vrot.slane %v1605_v42, 2 }
 0x298   : > { %v1607_v63 = vadd.f32 %v1606_v43, %v1605_v42 }
 0x29a   : > { %v1608_v44 = vrot.slane %v1607_v63, 1 }
 0x29c   : > { %v1609_v46 = vadd.f32 %v1608_v44, %v1607_v63 }
 0x29e   : > { %v1610_v47 = vadd.f32 %v1609_v46, %v1572_v45 }
 0x2a0   : > { %1612 = vst.msk [vmem:[#allocation5] sm:$0x1] %vm1611_vm3, %v1610_v47 }
 0x2a1 PF: > { %p2557_p6 = scmp.ne.s32.totalorder %s3102_s21, 1 }
 0x2a2   : > { %vm1622_vm7 = vcmask (!%p2557_p6), 516096   ;;  %v1625_v50 = vld [vmem:[#allocation4] sm:$0xff] (!%p2557_p6)  ;;  %v1626_v51 = vld [vmem:[#allocation4 + $0x8] sm:$0xff] (!%p2557_p6)  ;;  %v1627_v53 = vld [vmem:[#allocation4 + $0x10] sm:$0xff] (!%p2557_p6)  ;;  %vm1681_vm8 = vcmask (!%p2557_p6), 523264  }
 0x2a3   : > { %1616 = sbr.rel (%p2557_p6) target bundleno = 740 (0x2e4), region = 80  ;;  %v1628_v56 = vld [vmem:[#allocation4 + $0x18] sm:$0xff] (!%p2557_p6)  ;;  %v1629_v58 = vld [vmem:[#allocation4 + $0x20] sm:$0xff] (!%p2557_p6)  ;;  %v1630_v62 = vld [vmem:[#allocation4 + $0x28] sm:$0xff] (!%p2557_p6) }
 0x2a4   : > { %v1631_v3 = vld [vmem:[#allocation4 + $0x30] sm:$0xff] (!%p2557_p6)  ;;  %v1632_v8 = vld [vmem:[#allocation4 + $0x38] sm:$0xff] (!%p2557_p6)  ;;  %v1633_v18 = vld [vmem:[#allocation4 + $0x40] sm:$0xff] (!%p2557_p6) }
 0x2a5   : > { %v1634_v21 = vld [vmem:[#allocation4 + $0x48] sm:$0xff] (!%p2557_p6)  ;;  %v1635_v25 = vld [vmem:[#allocation4 + $0x50] sm:$0xff] (!%p2557_p6)  ;;  %v1636_v30 = vld [vmem:[#allocation4 + $0x58] sm:$0xff] (!%p2557_p6) }
 0x2a6   : > { %v1637_v33 = vld [vmem:[#allocation4 + $0x60] sm:$0xff] (!%p2557_p6)  ;;  %v1638_v17 = vld [vmem:[#allocation4 + $0x68] sm:$0xff] (!%p2557_p6)  ;;  %v1639_v42 = vld [vmem:[#allocation4 + $0x70] sm:$0xff] (!%p2557_p6) }
 0x2a7   : > { %v1620_v48 = vld [vmem:[#allocation5] sm:$0x1] (!%p2557_p6)  ;;  %v1640_v46 = vld [vmem:[#allocation4 + $0x78] sm:$0xff] (!%p2557_p6) }
 0x2a8   : > { %v1621_v49 = vmul.f32 (!%p2557_p6), 0.0078125, %v1620_v48 }
 0x2aa   : > { %1623 = vst.msk [vmem:[#allocation7] sm:$0x1] %vm1622_vm7, %v1621_v49 }
 0x2b1   : > { %v3530_v52 = vld [vmem:[#allocation7] ss:$0 sm:$0xff] }
 0x2b2   : > { %v1648_v54 = vsub.f32 %v1625_v50, %v3530_v52  ;;  %v1649_v55 = vsub.f32 %v1626_v51, %v3530_v52  ;;  %v1650_v57 = vsub.f32 %v1627_v53, %v3530_v52  ;;  %v1651_v59 = vsub.f32 %v1628_v56, %v3530_v52 }
 0x2b3   : > { %v1652_v0 = vsub.f32 %v1629_v58, %v3530_v52  ;;  %v1653_v4 = vsub.f32 %v1630_v62, %v3530_v52  ;;  %v1654_v10 = vsub.f32 %v1631_v3, %v3530_v52  ;;  %v1655_v19 = vsub.f32 %v1632_v8, %v3530_v52 }
 0x2b4   : > { %v1665_v60 = vmul.f32 %v1648_v54, %v1648_v54  ;;  %v1666_v61 = vmul.f32 %v1649_v55, %v1649_v55  ;;  %v1667_v1 = vmul.f32 %v1650_v57, %v1650_v57  ;;  %v1668_v5 = vmul.f32 %v1651_v59, %v1651_v59 }
 0x2b5   : > { %v1669_v11 = vmul.f32 %v1652_v0, %v1652_v0  ;;  %v1670_v13 = vmul.f32 %v1653_v4, %v1653_v4  ;;  %v1656_v14 = vsub.f32 %v1633_v18, %v3530_v52  ;;  %v1671_v23 = vmul.f32 %v1654_v10, %v1654_v10 }
 0x2b6   : > { %v1682_v6 = vsel %vm1681_vm8, %v1665_v60, 0.0  ;;  %v1683_v7 = vsel %vm1681_vm8, %v1666_v61, 0.0  ;;  %v1685_v12 = vsel %vm1681_vm8, %v1667_v1, 0.0  ;;  %v1687_v20 = vsel %vm1681_vm8, %v1668_v5, 0.0 }
 0x2b7   : > { %v1684_v9 = vadd.f32 %v1683_v7, %v1682_v6  ;;  %v1689_v24 = vsel %vm1681_vm8, %v1669_v11, 0.0  ;;  %v1657_v27 = vsub.f32 %v1634_v21, %v3530_v52  ;;  %v1672_v28 = vmul.f32 %v1655_v19, %v1655_v19 }
 0x2b8   : > { %v1691_v29 = vsel %vm1681_vm8, %v1670_v13, 0.0  ;;  %v1658_v15 = vsub.f32 %v1635_v25, %v3530_v52  ;;  %v1673_v32 = vmul.f32 %v1656_v14, %v1656_v14  ;;  %v1693_v16 = vsel %vm1681_vm8, %v1671_v23, 0.0 }
 0x2b9   : > { %v1686_v2 = vadd.f32 %v1685_v12, %v1684_v9  ;;  %v1659_v35 = vsub.f32 %v1636_v30, %v3530_v52  ;;  %v1674_v36 = vmul.f32 %v1657_v27, %v1657_v27  ;;  %v1695_v37 = vsel %vm1681_vm8, %v1672_v28, 0.0  ;;  %v1664_v9 = vld [vmem:[#allocation6] sm:$0x1] }
 0x2ba   : > { %v1660_v39 = vsub.f32 %v1637_v33, %v3530_v52  ;;  %v1675_v40 = vmul.f32 %v1658_v15, %v1658_v15  ;;  %v1697_v41 = vsel %vm1681_vm8, %v1673_v32, 0.0  ;;  %v1661_v63 = vsub.f32 %v1638_v17, %v3530_v52 }
 0x2bb   : > { %v1688_v22 = vadd.f32 %v1687_v20, %v1686_v2  ;;  %v1676_v44 = vmul.f32 %v1659_v35, %v1659_v35  ;;  %v1699_v45 = vsel %vm1681_vm8, %v1674_v36, 0.0  ;;  %v1662_v48 = vsub.f32 %v1639_v42, %v3530_v52 }
 0x2bc   : > { %v1677_v49 = vmul.f32 %v1660_v39, %v1660_v39  ;;  %v1701_v50 = vsel %vm1681_vm8, %v1675_v40, 0.0  ;;  %v1663_v53 = vsub.f32 %v1640_v46, %v3530_v52  ;;  %v1678_v54 = vmul.f32 %v1661_v63, %v1661_v63 }
 0x2bd   : > { %v1690_v26 = vadd.f32 %v1689_v24, %v1688_v22  ;;  %v1703_v55 = vsel %vm1681_vm8, %v1676_v44, 0.0  ;;  %v1679_v57 = vmul.f32 %v1662_v48, %v1662_v48 }
 0x2be   : > { %v1705_v58 = vsel %vm1681_vm8, %v1677_v49, 0.0  ;;  %v1680_v60 = vmul.f32 %v1663_v53, %v1663_v53  ;;  %v1707_v61 = vsel %vm1681_vm8, %v1678_v54, 0.0 }
 0x2bf   : > { %v1692_v31 = vadd.f32 %v1691_v29, %v1690_v26  ;;  %v1709_v0 = vsel %vm1681_vm8, %v1679_v57, 0.0 }
 0x2c0   : > { %v1711_v3 = vsel %vm1681_vm8, %v1680_v60, 0.0 }
 0x2c1   : > { %v1694_v34 = vadd.f32 %v1693_v16, %v1692_v31 }
 0x2c3   : > { %v1696_v38 = vadd.f32 %v1695_v37, %v1694_v34 }
 0x2c5   : > { %v1698_v43 = vadd.f32 %v1697_v41, %v1696_v38 }
 0x2c7   : > { %v1700_v47 = vadd.f32 %v1699_v45, %v1698_v43 }
 0x2c9   : > { %v1702_v51 = vadd.f32 %v1701_v50, %v1700_v47 }
 0x2cb   : > { %v1704_v56 = vadd.f32 %v1703_v55, %v1702_v51 }
 0x2cd   : > { %v1706_v59 = vadd.f32 %v1705_v58, %v1704_v56 }
 0x2cf   : > { %v1708_v62 = vadd.f32 %v1707_v61, %v1706_v59 }
 0x2d1   : > { %v1710_v1 = vadd.f32 %v1709_v0, %v1708_v62 }
 0x2d3   : > { %v1712_v4 = vadd.f32 %v1711_v3, %v1710_v1 }
 0x2d5   : > { %v1713_v5 = vrot.slane %v1712_v4, 4 }
 0x2d7   : > { %v1714_v52 = vadd.f32 %v1713_v5, %v1712_v4 }
 0x2d9   : > { %v1715_v6 = vrot.slane %v1714_v52, 2 }
 0x2db   : > { %v1716_v7 = vadd.f32 %v1715_v6, %v1714_v52 }
 0x2dd   : > { %v1717_v8 = vrot.slane %v1716_v7, 1 }
 0x2df   : > { %v1718_v10 = vadd.f32 %v1717_v8, %v1716_v7 }
 0x2e1   : > { %v1719_v11 = vadd.f32 %v1718_v10, %v1664_v9 }
 0x2e3   : > { %1721 = vst.msk [vmem:[#allocation6] sm:$0x1] %vm1622_vm7, %v1719_v11 }
 0x2e4 PF: > { %p2559_p7 = scmp.ne.s32.totalorder %s3102_s21, 2 }
 0x2e5   : > { %v1729_v19 = vld [vmem:[%s3951_s8] sm:$0x1] (!%p2559_p7)  ;;  %vm1735_vm9 = vcmask (!%p2559_p7), 516096   ;;  %v1745_v24 = vld [vmem:[#allocation4 + $0x10] sm:$0xff] (!%p2559_p7)  ;;  %v1746_v26 = vld [vmem:[#allocation4 + $0x18] sm:$0xff] (!%p2559_p7)  ;;  %s3115_s21 = smov (!%p2559_p7), 96  }
 0x2e6   : > { %1725 = sbr.rel (%p2559_p7) target bundleno = 1285 (0x505), region = 88  ;;  %v1737_v22 = vld [vmem:[%s3952_s9] sm:$0x1] (!%p2559_p7)  ;;  %v1744_v27 = vld [vmem:[#allocation4 + $0x8] sm:$0xff] (!%p2559_p7)  ;;  %v1750_v33 = vld [vmem:[#allocation4 + $0x38] sm:$0xff] (!%p2559_p7) }
 0x2e7   : > { %v1743_v25 = vld [vmem:[#allocation4] sm:$0xff] (!%p2559_p7)  ;;  %v1748_v28 = vld [vmem:[#allocation4 + $0x28] sm:$0xff] (!%p2559_p7)  ;;  %v1749_v34 = vld [vmem:[#allocation4 + $0x30] sm:$0xff] (!%p2559_p7) }
 0x2e8   : > { %v1747_v30 = vld [vmem:[#allocation4 + $0x20] sm:$0xff] (!%p2559_p7)  ;;  %v1752_v37 = vld [vmem:[#allocation4 + $0x48] sm:$0xff] (!%p2559_p7)  ;;  %v1754_v44 = vld [vmem:[#allocation4 + $0x58] sm:$0xff] (!%p2559_p7) }
 0x2e9   : > { %v1751_v40 = vld [vmem:[#allocation4 + $0x40] sm:$0xff] (!%p2559_p7)  ;;  %v1753_v47 = vld [vmem:[#allocation4 + $0x50] sm:$0xff] (!%p2559_p7)  ;;  %v1756_v57 = vld [vmem:[#allocation4 + $0x68] sm:$0xff] (!%p2559_p7) }
 0x2ea   : > { %v1730_v12 = vld [vmem:[#allocation6] sm:$0x1] (!%p2559_p7)  ;;  %v1758_v9 = vld [vmem:[#allocation4 + $0x78] sm:$0xff] (!%p2559_p7) }
 0x2eb   : > { %v1731_v18 = vmul.f32 (!%p2559_p7), 0.0078125, %v1730_v12  ;;  %v1738_v20 = vld [vmem:[#allocation7] sm:$0x1] (!%p2559_p7) }
 0x2ec   : > { %v1755_v6 = vld [vmem:[#allocation4 + $0x60] sm:$0xff] (!%p2559_p7) }
 0x2ed   : > { %v1732_v2 = vadd.f32 1e-05, %v1731_v18  ;;  %v1757_v18 = vld [vmem:[#allocation4 + $0x70] sm:$0xff] }
 0x2ef   : > { %2918 = vrsqrt.f32 %v1732_v2 }
 0x2f9   : > { %v2919_v13 = vpop.eup %2918 }
 0x2fa   : > { %v1734_v21 = vmul.f32 %v2919_v13, %v1729_v19 }
 0x2fc   : > { %1736 = vst.msk [vmem:[#allocation8] sm:$0x1] %vm1735_vm9, %v1734_v21  ;;  %v1739_v14 = vmul.f32 %v1738_v20, %v1734_v21 }
 0x2fe   : > { %v1740_v23 = vsub.f32 %v1737_v22, %v1739_v14 }
 0x300   : > { %1741 = vst.msk [vmem:[#allocation9] sm:$0x1] %vm1735_vm9, %v1740_v23 }
 0x303   : > { %v3572_v29 = vld [vmem:[#allocation8] ss:$0 sm:$0xff] }
 0x304   : > { %v1768_v31 = vmul.f32 %v3572_v29, %v1745_v24  ;;  %v1766_v15 = vmul.f32 %v3572_v29, %v1743_v25  ;;  %v1769_v32 = vmul.f32 %v3572_v29, %v1746_v26  ;;  %v1767_v16 = vmul.f32 %v3572_v29, %v1744_v27 }
 0x305   : > { %v1771_v35 = vmul.f32 %v3572_v29, %v1748_v28  ;;  %v1770_v36 = vmul.f32 %v3572_v29, %v1747_v30  ;;  %v1773_v38 = vmul.f32 %v3572_v29, %v1750_v33  ;;  %v1772_v39 = vmul.f32 %v3572_v29, %v1749_v34 }
 0x306   : > { %v1775_v46 = vmul.f32 %v3572_v29, %v1752_v37  ;;  %v1774_v51 = vmul.f32 %v3572_v29, %v1751_v40  ;;  %v1777_v56 = vmul.f32 %v3572_v29, %v1754_v44  ;;  %v1776_v60 = vmul.f32 %v3572_v29, %v1753_v47 }
 0x307   : > { %v3580_v17 = vld [vmem:[#allocation9] ss:$0 sm:$0xff]  ;;  %v1779_v0 = vmul.f32 %v3572_v29, %v1756_v57  ;;  %v1778_v12 = vmul.f32 %v3572_v29, %v1755_v6  ;;  %v1781_v19 = vmul.f32 %v3572_v29, %v1758_v9  ;;  %v1780_v20 = vmul.f32 %v3572_v29, %v1757_v18 }
 0x308   : > { %v3585_v41 = vadd.f32 %v3580_v17, %v1768_v31  ;;  %v3588_v42 = vadd.f32 %v3580_v17, %v1766_v15  ;;  %v3591_v43 = vadd.f32 %v3580_v17, %v1769_v32  ;;  %v3594_v63 = vadd.f32 %v3580_v17, %v1767_v16 }
 0x309   : > { %v3597_v45 = vadd.f32 %v3580_v17, %v1771_v35  ;;  %v3603_v50 = vadd.f32 %v3580_v17, %v1770_v36  ;;  %v3609_v55 = vadd.f32 %v3580_v17, %v1773_v38  ;;  %v3614_v59 = vadd.f32 %v3580_v17, %v1772_v39 }
 0x30a   : > { %v1921_v48 = vmul.f32 1.442695, %v3585_v41  ;;  %v1917_v49 = vmul.f32 1.442695, %v3588_v42  ;;  %v1923_v53 = vmul.f32 1.442695, %v3591_v43  ;;  %v3619_v62 = vadd.f32 %v3580_v17, %v1775_v46 }
 0x30b   : > { %v1919_v54 = vmul.f32 1.442695, %v3594_v63  ;;  %v1927_v58 = vmul.f32 1.442695, %v3597_v45  ;;  %v1925_v61 = vmul.f32 1.442695, %v3603_v50  ;;  %v3624_v3 = vadd.f32 %v3580_v17, %v1774_v51 }
 0x30c   : > { %2920 = vpow2.f32 %v1921_v48  ;;  %v1931_v1 = vmul.f32 1.442695, %v3609_v55  ;;  %v3627_v4 = vadd.f32 %v3580_v17, %v1777_v56  ;;  %v1929_v5 = vmul.f32 1.442695, %v3614_v59 }
 0x30d   : > { %2922 = vpow2.f32 %v1917_v49  ;;  %v3631_v52 = vadd.f32 %v3580_v17, %v1776_v60  ;;  %v1935_v7 = vmul.f32 1.442695, %v3619_v62  ;;  %v1933_v8 = vmul.f32 1.442695, %v3624_v3 }
 0x30e   : > { %2924 = vpow2.f32 %v1923_v53  ;;  %v1939_v10 = vmul.f32 1.442695, %v3627_v4  ;;  %v3637_v11 = vadd.f32 %v3580_v17, %v1779_v0  ;;  %v3645_v23 = vadd.f32 %v3580_v17, %v1778_v12 }
 0x30f   : > { %2926 = vpow2.f32 %v1919_v54  ;;  %v1937_v2 = vmul.f32 1.442695, %v3631_v52  ;;  %v3648_v31 = vadd.f32 %v3580_v17, %v1781_v19  ;;  %v3651_v16 = vadd.f32 %v3580_v17, %v1780_v20 }
 0x310   : > { %2928 = vpow2.f32 %v1927_v58  ;;  %v1943_v14 = vmul.f32 1.442695, %v3637_v11  ;;  %v3654_v35 = vmul.f32 1.442695, %v3645_v23  ;;  %vm1903_vm10 = vcmp.gt.f32.partialorder %v3585_v41, 20.0 }
 0x311   : > { %2930 = vpow2.f32 %v1925_v61  ;;  %vm1901_vm11 = vcmp.gt.f32.partialorder %v3588_v42, 20.0  ;;  %vm1904_vm13 = vcmp.gt.f32.partialorder %v3591_v43, 20.0  ;;  %vm1902_vm15 = vcmp.gt.f32.partialorder %v3594_v63, 20.0 }
 0x312   : > { %2932 = vpow2.f32 %v1931_v1  ;;  %vm1906_vm1 = vcmp.gt.f32.partialorder %v3597_v45, 20.0  ;;  %vm1905_vm5 = vcmp.gt.f32.partialorder %v3603_v50, 20.0  ;;  %vm1908_vm3 = vcmp.gt.f32.partialorder %v3609_v55, 20.0 }
 0x313   : > { %2934 = vpow2.f32 %v1929_v5  ;;  %vm1907_vm7 = vcmp.gt.f32.partialorder %v3614_v59, 20.0 }
 0x314   : > { %2936 = vpow2.f32 %v1935_v7 }
 0x315   : > { %2938 = vpow2.f32 %v1933_v8 }
 0x316   : > { %v2921_v13 = vpop.eup %2920  ;;  %2940 = vpow2.f32 %v1939_v10 }
 0x317   : > { %v2923_v21 = vpop.eup %2922  ;;  %v1967_v22 = vadd.f32 1.0, %v2921_v13  ;;  %v1970_v25 = vmul.f32 -0.5, %v2921_v13  ;;  %2942 = vpow2.f32 %v1937_v2  ;;  %v1973_v15 = vand.u32 2147483647, %v2921_v13 }
 0x318   : > { %v2925_v24 = vpop.eup %2924  ;;  %v1949_v26 = vadd.f32 1.0, %v2923_v21  ;;  %v1952_v27 = vmul.f32 -0.5, %v2923_v21  ;;  %v1955_v33 = vand.u32 2147483647, %v2923_v21 }
 0x319   : > { %v2927_v28 = vpop.eup %2926  ;;  %2944 = vlog2.f32 %v1967_v22  ;;  %v1976_v30 = vadd.f32 1.0, %v2925_v24  ;;  %v1979_v32 = vmul.f32 -0.5, %v2925_v24  ;;  %v1971_v37 = vadd.f32 1.0, %v1970_v25 }
 0x31a   : > { %v2929_v29 = vpop.eup %2928  ;;  %2946 = vlog2.f32 %v1949_v26  ;;  %v1958_v34 = vadd.f32 1.0, %v2927_v28  ;;  %v1953_v38 = vadd.f32 1.0, %v1952_v27  ;;  %v1961_v39 = vmul.f32 -0.5, %v2927_v28 }
 0x31b   : > { %2948 = vlog2.f32 %v1976_v30  ;;  %v3656_v36 = vpop.eup %2930  ;;  %v1982_v17 = vand.u32 2147483647, %v2925_v24  ;;  %v1994_v44 = vadd.f32 1.0, %v2929_v29  ;;  %v1997_v46 = vmul.f32 -0.5, %v2929_v29 }
 0x31c   : > { %2950 = vpow2.f32 %v1943_v14  ;;  %v3659_v40 = vpop.eup %2932  ;;  %vm3664_vm12 = vcmp.lt.f32.partialorder %v1973_v15, 0.0004427343  ;;  %v1980_v49 = vadd.f32 1.0, %v1979_v32  ;;  %v1962_v51 = vadd.f32 1.0, %v1961_v39 }
 0x31d   : > { %2952 = vlog2.f32 %v1958_v34  ;;  %v3662_v47 = vpop.eup %2934  ;;  %v1964_v53 = vand.u32 2147483647, %v2927_v28  ;;  %v2000_v56 = vand.u32 2147483647, %v2929_v29  ;;  %v1985_v57 = vadd.f32 1.0, %v3656_v36 }
 0x31e   : > { %v3669_v54 = vpop.eup %2936  ;;  %2954 = vlog2.f32 %v1994_v44  ;;  %v1988_v58 = vmul.f32 -0.5, %v3656_v36  ;;  %v1972_v61 = vmul.f32 %v2921_v13, %v1971_v37  ;;  %vm3675_vm14 = vcmp.lt.f32.partialorder %v1955_v33, 0.0004427343 }
 0x31f   : > { %v3673_v60 = vpop.eup %2938  ;;  %v1991_v1 = vand.u32 2147483647, %v3656_v36  ;;  %v2012_v5 = vadd.f32 1.0, %v3659_v40  ;;  %v1954_v7 = vmul.f32 %v2923_v21, %v1953_v38  ;;  %vm3684_vm0 = vcmp.lt.f32.partialorder %v1982_v17, 0.0004427343 }
 0x320   : > { %v3682_v6 = vpop.eup %2940  ;;  %v1998_v9 = vadd.f32 1.0, %v1997_v46  ;;  %2956 = vlog2.f32 %v1985_v57  ;;  %v1981_v12 = vmul.f32 %v2925_v24, %v1980_v49  ;;  %v2015_v18 = vmul.f32 -0.5, %v3659_v40 }
 0x321   : > { %v3688_v10 = vpop.eup %2942  ;;  %2958 = vlog2.f32 %v2012_v5  ;;  %v2003_v2 = vadd.f32 1.0, %v3662_v47  ;;  %v1963_v13 = vmul.f32 %v2927_v28, %v1962_v51  ;;  %vm3693_vm2 = vcmp.lt.f32.partialorder %v1964_v53, 0.0004427343 }
 0x322   : > { %vm3697_vm4 = vcmp.lt.f32.partialorder %v2000_v56, 0.0004427343  ;;  %v1989_v22 = vadd.f32 1.0, %v1988_v58  ;;  %vm3702_vm6 = vcmp.lt.f32.partialorder %v1991_v1, 0.0004427343  ;;  %v2030_v26 = vadd.f32 1.0, %v3669_v54 }
 0x323   : > { %v2945_v19 = vpop.eup %2944  ;;  %2960 = vlog2.f32 %v2003_v2  ;;  %v1999_v30 = vmul.f32 %v2929_v29, %v1998_v9  ;;  %v2018_v15 = vand.u32 2147483647, %v3659_v40  ;;  %v2006_v32 = vmul.f32 -0.5, %v3662_v47 }
 0x324   : > { %v2947_v14 = vpop.eup %2946  ;;  %v1969_v24 = vmul.f32 0.6931472, %v2945_v19  ;;  %v2016_v38 = vadd.f32 1.0, %v2015_v18  ;;  %2962 = vlog2.f32 %v2030_v26  ;;  %v1990_v44 = vmul.f32 %v3656_v36, %v1989_v22 }
 0x325   : > { %v2949_v27 = vpop.eup %2948  ;;  %v1951_v28 = vmul.f32 0.6931472, %v2947_v14  ;;  %v2033_v46 = vmul.f32 -0.5, %v3669_v54  ;;  %v2009_v53 = vand.u32 2147483647, %v3662_v47  ;;  %v2007_v58 = vadd.f32 1.0, %v2006_v32 }
 0x326   : > { %v3709_v33 = vpop.eup %2950  ;;  %v1975_v34 = vsel %vm3664_vm12, %v1972_v61, %v1969_v24  ;;  %v1978_v37 = vmul.f32 0.6931472, %v2949_v27  ;;  %vm3733_vm8 = vcmp.lt.f32.partialorder %v2018_v15, 0.0004427343  ;;  %v2021_v61 = vadd.f32 1.0, %v3673_v60 }
 0x327   : > { %v2953_v39 = vpop.eup %2952  ;;  %v2095_v17 = vsel %vm1903_vm10, %v3585_v41, %v1975_v34  ;;  %v1957_v29 = vsel %vm3675_vm14, %v1954_v7, %v1951_v28  ;;  %v2017_v5 = vmul.f32 %v3659_v40, %v2016_v38  ;;  %v2036_v7 = vand.u32 2147483647, %v3669_v54 }
 0x328   : > { %2129 = vrot.lane.b32.xlu1 %v2095_v17, %s3115_s21  ;;  %v2093_v48 = vsel %vm1901_vm11, %v3588_v42, %v1957_v29  ;;  %v1984_v49 = vsel %vm3684_vm0, %v1981_v12, %v1978_v37  ;;  %v1960_v51 = vmul.f32 0.6931472, %v2953_v39  ;;  %v2955_v56 = vpop.eup %2954  ;;  %v2034_v12 = vadd.f32 1.0, %v2033_v46 }
 0x329   : > { %2125 = vrot.lane.b32.xlu0 %v2093_v48, %s3115_s21  ;;  %v2096_v36 = vsel %vm1904_vm13, %v3591_v43, %v1984_v49  ;;  %v1996_v1 = vmul.f32 0.6931472, %v2955_v56  ;;  %2964 = vlog2.f32 %v2021_v61  ;;  %v2048_v18 = vadd.f32 1.0, %v3682_v6 }
 0x32a   : > { %v1966_v0 = vsel %vm3693_vm2, %v1963_v13, %v1960_v51  ;;  %v2957_v8 = vpop.eup %2956  ;;  %vm3749_vm9 = vcmp.lt.f32.partialorder %v2009_v53, 0.0004427343  ;;  %v2024_v20 = vmul.f32 -0.5, %v3673_v60  ;;  %v2008_v24 = vmul.f32 %v3662_v47, %v2007_v58 }
 0x32b   : > { %v2094_v9 = vsel %vm1902_vm15, %v3594_v63, %v1966_v0  ;;  %v2959_v2 = vpop.eup %2958  ;;  %v2002_v19 = vsel %vm3697_vm4, %v1999_v30, %v1996_v1  ;;  %v1987_v13 = vmul.f32 0.6931472, %v2957_v8  ;;  %2966 = vlog2.f32 %v2048_v18 }
 0x32c   : > { %2131 = vrot.lane.b32.xlu1 %v2096_v36, %s3115_s21  ;;  %v2098_v22 = vsel %vm1906_vm1, %v3597_v45, %v2002_v19  ;;  %v2014_v14 = vmul.f32 0.6931472, %v2959_v2  ;;  %vm3761_vm10 = vcmp.lt.f32.partialorder %v2036_v7, 0.0004427343  ;;  %v2051_v28 = vmul.f32 -0.5, %v3682_v6 }
 0x32d   : > { %2127 = vrot.lane.b32.xlu0 %v2094_v9, %s3115_s21  ;;  %v2961_v26 = vpop.eup %2960  ;;  %v1993_v21 = vsel %vm3702_vm6, %v1990_v44, %v1987_v13  ;;  %v2039_v30 = vadd.f32 1.0, %v3688_v10  ;;  %v2035_v34 = vmul.f32 %v3669_v54, %v2034_v12  ;;  %v2025_v37 = vadd.f32 1.0, %v2024_v20 }
 0x32e   : > { %v2097_v15 = vsel %vm1905_vm5, %v3603_v50, %v1993_v21  ;;  %v2020_v47 = vsel %vm3733_vm8, %v2017_v5, %v2014_v14  ;;  %v2005_v32 = vmul.f32 0.6931472, %v2961_v26  ;;  %v2963_v25 = vpop.eup %2962  ;;  %v2027_v38 = vand.u32 2147483647, %v3673_v60 }
 0x32f   : > { %2968 = vlog2.f32 %v2039_v30  ;;  %v2042_v39 = vmul.f32 -0.5, %v3688_v10  ;;  %v2100_v17 = vsel %vm1908_vm3, %v3609_v55, %v2020_v47  ;;  %v2032_v44 = vmul.f32 0.6931472, %v2963_v25 }
 0x330   : > { %2135 = vrot.lane.b32.xlu1 %v2098_v22, %s3115_s21  ;;  %v2011_v29 = vsel %vm3749_vm9, %v2008_v24, %v2005_v32  ;;  %v1947_v54 = vmul.f32 1.442695, %v3648_v31  ;;  %vm1910_vm11 = vcmp.gt.f32.partialorder %v3619_v62, 20.0  ;;  %v2052_v48 = vadd.f32 1.0, %v2051_v28 }
 0x331   : > { %2133 = vrot.lane.b32.xlu0 %v2097_v15, %s3115_s21  ;;  %v2099_v46 = vsel %vm1907_vm7, %v3614_v59, %v2011_v29  ;;  %v2066_v49 = vadd.f32 1.0, %v3709_v33  ;;  %v2038_v51 = vsel %vm3761_vm10, %v2035_v34, %v2032_v44  ;;  %v2054_v53 = vand.u32 2147483647, %v3682_v6 }
 0x332   : > { %2970 = vpow2.f32 %v3654_v35  ;;  %v2026_v56 = vmul.f32 %v3673_v60, %v2025_v37  ;;  %vm3794_vm12 = vcmp.lt.f32.partialorder %v2027_v38, 0.0004427343  ;;  %v2043_v57 = vadd.f32 1.0, %v2042_v39 }
 0x333   : > { %2972 = vlog2.f32 %v2066_v49  ;;  %v2965_v58 = vpop.eup %2964  ;;  %v2102_v61 = vsel %vm1910_vm11, %v3619_v62, %v2038_v51  ;;  %v2069_v0 = vmul.f32 -0.5, %v3709_v33  ;;  %v1945_v35 = vmul.f32 1.442695, %v3651_v16 }
 0x334   : > { %2139 = vrot.lane.b32.xlu1 %v2100_v17, %s3115_s21  ;;  %2974 = vpow2.f32 %v1947_v54  ;;  %vm1909_vm13 = vcmp.gt.f32.partialorder %v3624_v3, 20.0  ;;  %v2023_v1 = vmul.f32 0.6931472, %v2965_v58  ;;  %v2053_v60 = vmul.f32 %v3682_v6, %v2052_v48 }
 0x335   : > { %2137 = vrot.lane.b32.xlu0 %v2099_v46, %s3115_s21  ;;  %v2045_v5 = vand.u32 2147483647, %v3688_v10  ;;  %v2967_v7 = vpop.eup %2966  ;;  %vm2055_vm14 = vcmp.lt.f32.partialorder %v2054_v53, 0.0004427343  ;;  %2976 = vpow2.f32 %v1945_v35  ;;  %vm1912_vm15 = vcmp.gt.f32.partialorder %v3627_v4, 20.0 }
 0x336   : > { %v2029_v8 = vsel %vm3794_vm12, %v2026_v56, %v2023_v1  ;;  %v2050_v9 = vmul.f32 0.6931472, %v2967_v7  ;;  %v2044_v18 = vmul.f32 %v3688_v10, %v2043_v57  ;;  %v2070_v2 = vadd.f32 1.0, %v2069_v0 }
 0x337   : > { %v2101_v12 = vsel %vm1909_vm13, %v3624_v3, %v2029_v8  ;;  %vm2046_vm0 = vcmp.lt.f32.partialorder %v2045_v5, 0.0004427343  ;;  %v2072_v13 = vand.u32 2147483647, %v3709_v33  ;;  %vm1911_vm1 = vcmp.gt.f32.partialorder %v3631_v52, 20.0 }
 0x338   : > { %2143 = vrot.lane.b32.xlu1 %v2102_v61, %s3115_s21  ;;  %v2056_v6 = vsel %vm2055_vm14, %v2053_v60, %v2050_v9  ;;  %v2071_v24 = vmul.f32 %v3709_v33, %v2070_v2  ;;  %vm1914_vm4 = vcmp.gt.f32.partialorder %v3637_v11, 20.0  ;;  %v2189_v37 = vlaneseq }
 0x339   : > { %v2969_v19 = vpop.eup %2968  ;;  %2141 = vrot.lane.b32.xlu0 %v2101_v12, %s3115_s21  ;;  %v2104_v40 = vsel %vm1912_vm15, %v3627_v4, %v2056_v6  ;;  %vm2073_vm2 = vcmp.lt.f32.partialorder %v2072_v13, 0.0004427343  ;;  %vm1913_vm5 = vcmp.gt.f32.partialorder %v3645_v23, 20.0  ;;  %vm1916_vm10 = vcmp.gt.f32.partialorder %v3648_v31, 20.0 }
 0x33a   : > { %v2041_v20 = vmul.f32 0.6931472, %v2969_v19  ;;  %v2192_v29 = vshrl.u32 %v2189_v37, 7  ;;  %v2190_v53 = vand.u32 127, %v2189_v37  ;;  %v3116_v13 = vmov 1.0  }
 0x33b   : > { %vm1915_vm13 = vcmp.gt.f32.partialorder %v3651_v16, 20.0  ;;  %v2575_v60 = vmul.f32 -1.442695, %v3637_v11 }
 0x33c   : > { %2147 = vrot.lane.b32.xlu1 %v2104_v40, %s3115_s21  ;;  %v2971_v22 = vpop.eup %2970  ;;  %v2047_v14 = vsel %vm2046_vm0, %v2044_v18, %v2041_v20  ;;  %v2198_v46 = vadd.s32 1, %v2192_v29  ;;  %v2193_v48 = vadd.s32 8, %v2192_v29  ;;  %v2194_v56 = vmul.u32 8, %v2192_v29 }
 0x33d   : > { %v2973_v10 = vpop.eup %2972  ;;  %v2103_v26 = vsel %vm1911_vm1, %v3631_v52, %v2047_v14  ;;  %v2057_v21 = vadd.f32 1.0, %v2971_v22  ;;  %v2060_v32 = vmul.f32 -0.5, %v2971_v22  ;;  %v2063_v17 = vand.u32 2147483647, %v2971_v22 }
 0x33e   : > { %v2975_v27 = vpop.eup %2974  ;;  %2145 = vrot.lane.b32.xlu0 %v2103_v26, %s3115_s21  ;;  %v2068_v28 = vmul.f32 0.6931472, %v2973_v10  ;;  %v2200_v61 = vmul.u32 8, %v2198_v46  ;;  %v2195_v0 = vmul.u32 8, %v2193_v48  ;;  %vm3827_vm3 = vcmp.ge.s32.totalorder %v2190_v53, %v2194_v56 }
 0x33f   : > { %2978 = vlog2.f32 %v2057_v21  ;;  %v2084_v30 = vadd.f32 1.0, %v2975_v27  ;;  %v2977_v15 = vpop.eup %2976  ;;  %v2087_v25 = vmul.f32 -0.5, %v2975_v27  ;;  %v2061_v38 = vadd.f32 1.0, %v2060_v32 }
 0x340   : > { %v2074_v47 = vsel %vm2073_vm2, %v2071_v24, %v2068_v28  ;;  %v2075_v33 = vadd.f32 1.0, %v2977_v15  ;;  %v2078_v39 = vmul.f32 -0.5, %v2977_v15  ;;  %v2090_v54 = vand.u32 2147483647, %v2975_v27 }
 0x341   : > { %v2106_v34 = vsel %vm1914_vm4, %v3637_v11, %v2074_v47  ;;  %2980 = vlog2.f32 %v2084_v30  ;;  %v2088_v44 = vadd.f32 1.0, %v2087_v25  ;;  %v2062_v49 = vmul.f32 %v2971_v22, %v2061_v38 }
 0x342   : > { %2151 = vrot.lane.b32.xlu1 %v2106_v34, %s3115_s21  ;;  %2982 = vlog2.f32 %v2075_v33  ;;  %v2079_v51 = vadd.f32 1.0, %v2078_v39  ;;  %vm3823_vm6 = vcmp.lt.f32.partialorder %v2063_v17, 0.0004427343  ;;  %v2081_v58 = vand.u32 2147483647, %v2977_v15 }
 0x343   : > { %v2089_v1 = vmul.f32 %v2975_v27, %v2088_v44  ;;  %vm3831_vm7 = vcmp.lt.f32.partialorder %v2090_v54, 0.0004427343  ;;  %vm2202_vm8 = vcmp.lt.s32.totalorder %v2190_v53, %v2200_v61  ;;  %vm3835_vm9 = vcmp.ge.s32.totalorder %v2190_v53, %v2195_v0 }
 0x344   : > { %v2199_v9 = vadd.s32 1, %v2193_v48  ;;  %v2080_v2 = vmul.f32 %v2977_v15, %v2079_v51  ;;  %vm2204_vm11 = vmand %vm3827_vm3, %vm2202_vm8  ;;  %vm2082_vm12 = vcmp.lt.f32.partialorder %v2081_v58, 0.0004427343  ;;  %v2564_v21 = vmul.f32 -1.442695, %v3585_v41 }
 0x345   : > { %2792 = vmatprep.mubr.msk.f32.mxu0 %vm2204_vm11, %v3116_v13  ;;  %v2562_v27 = vmul.f32 -1.442695, %v3588_v42  ;;  %v2565_v28 = vmul.f32 -1.442695, %v3591_v43  ;;  %v2563_v30 = vmul.f32 -1.442695, %v3594_v63 }
 0x346   : > { %v2201_v40 = vmul.u32 8, %v2199_v9  ;;  %2984 = vpow2.f32 %v2564_v21  ;;  %v2567_v15 = vmul.f32 -1.442695, %v3597_v45  ;;  %v2566_v47 = vmul.f32 -1.442695, %v3603_v50 }
 0x347   : > { %2986 = vpow2.f32 %v2562_v27  ;;  %v2569_v32 = vmul.f32 -1.442695, %v3609_v55  ;;  %v2568_v41 = vmul.f32 -1.442695, %v3614_v59  ;;  %v2571_v43 = vmul.f32 -1.442695, %v3619_v62 }
 0x348   : > { %vm3853_vm14 = vcmp.lt.s32.totalorder %v2190_v53, %v2201_v40  ;;  %2988 = vpow2.f32 %v2565_v28  ;;  %v2570_v25 = vmul.f32 -1.442695, %v3624_v3  ;;  %v2573_v50 = vmul.f32 -1.442695, %v3627_v4 }
 0x349   : > { %v2979_v36 = vpop.eup %2978  ;;  %vm2205_vm15 = vmand %vm3835_vm9, %vm3853_vm14  ;;  %2990 = vpow2.f32 %v2563_v30  ;;  %v2572_v17 = vmul.f32 -1.442695, %v3631_v52  ;;  %v2576_v28 = vmul.f32 -1.442695, %v3651_v16  ;;  %vm2286_vm0 = vcmask 261120  }
 0x34a   : > { %v2059_v35 = vmul.f32 0.6931472, %v2979_v36  ;;  %2992 = vpow2.f32 %v2567_v15 }
 0x34b   : > { %v2981_v5 = vpop.eup %2980  ;;  %2994 = vpow2.f32 %v2566_v47 }
 0x34c   : > { %v2065_v12 = vsel %vm3823_vm6, %v2062_v49, %v2059_v35  ;;  %v2086_v18 = vmul.f32 0.6931472, %v2981_v5  ;;  %v2983_v19 = vpop.eup %2982  ;;  %2996 = vpow2.f32 %v2569_v32 }
 0x34d   : > { %v2105_v6 = vsel %vm1913_vm5, %v3645_v23, %v2065_v12  ;;  %v2077_v22 = vmul.f32 0.6931472, %v2983_v19  ;;  %2998 = vpow2.f32 %v2568_v41  ;;  %v2574_v19 = vmul.f32 -1.442695, %v3645_v23 }
 0x34e   : > { %2149 = vrot.lane.b32.xlu0 %v2105_v6, %s3115_s21  ;;  %v2092_v20 = vsel %vm3831_vm7, %v2089_v1, %v2086_v18  ;;  %3000 = vpow2.f32 %v2571_v43 }
 0x34f   : > { %v2108_v14 = vsel %vm1916_vm10, %v3648_v31, %v2092_v20  ;;  %v2083_v10 = vsel %vm2082_vm12, %v2080_v2, %v2077_v22 }
 0x350   : > { %2155 = vrot.lane.b32.xlu1 %v2108_v14, %s3115_s21  ;;  %v2107_v26 = vsel %vm1915_vm13, %v3651_v16, %v2083_v10  ;;  %v2985_v34 = vpop.eup %2984  ;;  %v2577_v10 = vmul.f32 -1.442695, %v3648_v31 }
 0x351   : > { %v2987_v42 = vpop.eup %2986  ;;  %v1855_v63 = vadd.f32 1.0, %v2985_v34 }
 0x352   : > { %2153 = vrot.lane.b32.xlu0 %v2107_v26, %s3115_s21  ;;  %v2989_v33 = vpop.eup %2988  ;;  %v1853_v37 = vadd.f32 1.0, %v2987_v42 }
 0x353   : > { %v2991_v45 = vpop.eup %2990  ;;  %v1856_v38 = vadd.f32 1.0, %v2989_v33  ;;  %3002 = vrcp.f32 %v1855_v63 }
 0x354   : > { %v2993_v55 = vpop.eup %2992  ;;  %v1854_v39 = vadd.f32 1.0, %v2991_v45  ;;  %3004 = vpow2.f32 %v2570_v25 }
 0x355   : > { %v2995_v59 = vpop.eup %2994  ;;  %3006 = vrcp.f32 %v1853_v37  ;;  %v1858_v62 = vadd.f32 1.0, %v2993_v55 }
 0x356   : > { %3008 = vrcp.f32 %v1856_v38  ;;  %v2997_v29 = vpop.eup %2996  ;;  %v1857_v3 = vadd.f32 1.0, %v2995_v59 }
 0x357   : > { %3010 = vpow2.f32 %v2573_v50  ;;  %v2999_v44 = vpop.eup %2998  ;;  %v1860_v54 = vadd.f32 1.0, %v2997_v29 }
 0x358   : > { %3012 = vrcp.f32 %v1854_v39  ;;  %v3001_v46 = vpop.eup %3000  ;;  %v1859_v4 = vadd.f32 1.0, %v2999_v44 }
 0x359   : > { %3014 = vpow2.f32 %v2572_v17  ;;  %v1862_v56 = vadd.f32 1.0, %v3001_v46 }
 0x35a   : > { %3016 = vrcp.f32 %v1858_v62 }
 0x35b   : > { %3018 = vrcp.f32 %v1857_v3 }
 0x35c   : > { %3020 = vrcp.f32 %v1860_v54 }
 0x35d   : > { %v3003_v48 = vpop.eup %3002  ;;  %3022 = vrcp.f32 %v1859_v4 }
 0x35e   : > { %v3005_v49 = vpop.eup %3004  ;;  %3024 = vrcp.f32 %v1862_v56 }
 0x35f   : > { %v3007_v51 = vpop.eup %3006  ;;  %v1861_v58 = vadd.f32 1.0, %v3005_v49 }
 0x360   : > { %v3009_v52 = vpop.eup %3008 }
 0x361   : > { %v3011_v57 = vpop.eup %3010  ;;  %3026 = vrcp.f32 %v1861_v58 }
 0x362   : > { %v3013_v61 = vpop.eup %3012  ;;  %v1864_v9 = vadd.f32 1.0, %v3011_v57  ;;  %3028 = vpow2.f32 %v2575_v60 }
 0x363   : > { %v3015_v35 = vpop.eup %3014 }
 0x364   : > { %v3017_v12 = vpop.eup %3016  ;;  %v1863_v20 = vadd.f32 1.0, %v3015_v35  ;;  %3030 = vrcp.f32 %v1864_v9 }
 0x365   : > { %v3019_v6 = vpop.eup %3018  ;;  %3032 = vpow2.f32 %v2574_v19 }
 0x366   : > { %v3021_v11 = vpop.eup %3020  ;;  %3034 = vrcp.f32 %v1863_v20 }
 0x367   : > { %v3023_v30 = vpop.eup %3022  ;;  %3036 = vpow2.f32 %v2577_v10 }
 0x368   : > { %v3025_v41 = vpop.eup %3024  ;;  %3038 = vpow2.f32 %v2576_v28 }
 0x36b   : > { %v3027_v34 = vpop.eup %3026 }
 0x36c   : > { %v3029_v63 = vpop.eup %3028 }
 0x36d   : > { %v1866_v39 = vadd.f32 1.0, %v3029_v63 }
 0x36e   : > { %v3031_v25 = vpop.eup %3030 }
 0x36f   : > { %v3033_v37 = vpop.eup %3032  ;;  %3040 = vrcp.f32 %v1866_v39 }
 0x370   : > { %v3035_v50 = vpop.eup %3034  ;;  %v1865_v29 = vadd.f32 1.0, %v3033_v37  ;;  %v2341_v37 = vld [vmem:[%s3946_s3] sm:$0xff] }
 0x371   : > { %v3037_v59 = vpop.eup %3036 }
 0x372   : > { %v3039_v3 = vpop.eup %3038  ;;  %v1868_v54 = vadd.f32 1.0, %v3037_v59  ;;  %3042 = vrcp.f32 %v1865_v29 }
 0x373   : > { %v1867_v4 = vadd.f32 1.0, %v3039_v3 }
 0x374   : > { %3044 = vrcp.f32 %v1868_v54 }
 0x375   : > { %3046 = vrcp.f32 %v1867_v4 }
 0x39a   : > { %v2130_v53 = vpop.permute.xlu1 %2129 }
 0x39b   : > { %v2126_v36 = vpop.permute.xlu0 %2125  ;;  %v2175_v0 = vmul.f32 %v3003_v48, %v2130_v53  ;;  %v3041_v48 = vpop.eup %3040 }
 0x39c   : > { %v2173_v18 = vmul.f32 %v3007_v51, %v2126_v36  ;;  %v3043_v51 = vpop.eup %3042 }
 0x39d   : > { %v3045_v56 = vpop.eup %3044 }
 0x39e   : > { %v2132_v1 = vpop.permute.xlu1 %2131  ;;  %v3047_v57 = vpop.eup %3046 }
 0x39f   : > { %v2176_v5 = vmul.f32 %v3009_v52, %v2132_v1  ;;  %v2128_v7 = vpop.permute.xlu0 %2127 }
 0x3a0   : > { %v2174_v2 = vmul.f32 %v3013_v61, %v2128_v7 }
 0x3a1   : > { %v2823_v40 = vpack.c.bf16 %v2176_v5, %v2175_v0 }
 0x3a2   : > { %v2819_v22 = vpack.c.bf16 %v2174_v2, %v2173_v18  ;;  %v2136_v14 = vpop.permute.xlu1 %2135 }
 0x3a3   : > { %v2178_v26 = vmul.f32 %v3017_v12, %v2136_v14  ;;  %v2134_v21 = vpop.permute.xlu0 %2133 }
 0x3a4   : > { %2820 = vmatprep.subr.bf16.mxu0 %v2819_v22  ;;  %v2177_v27 = vmul.f32 %v3019_v6, %v2134_v21 }
 0x3a5   : > { %2822 = vmatpush3.bf16.msra.mxu0 %v2819_v22 }
 0x3a6   : > { %2824 = vmatprep.subr.bf16.mxu0 %v2823_v40  ;;  %v2827_v23 = vpack.c.bf16 %v2178_v26, %v2177_v27  ;;  %v2140_v15 = vpop.permute.xlu1 %2139 }
 0x3a7   : > { %v2180_v47 = vmul.f32 %v3021_v11, %v2140_v15  ;;  %v2138_v32 = vpop.permute.xlu0 %2137 }
 0x3a8   : > { %v2179_v31 = vmul.f32 %v3023_v30, %v2138_v32 }
 0x3a9   : > { %2826 = vmatpush3.bf16.msra.mxu0 %v2823_v40 }
 0x3aa   : > { %v2831_v42 = vpack.c.bf16 %v2180_v47, %v2179_v31  ;;  %2828 = vmatprep.subr.bf16.mxu0 %v2827_v23  ;;  %v2144_v43 = vpop.permute.xlu1 %2143 }
 0x3ab   : > { %v2182_v33 = vmul.f32 %v3025_v41, %v2144_v43  ;;  %v2142_v16 = vpop.permute.xlu0 %2141  ;;  %v2582_v43 = vld [vmem:[%s3953_s10] ss:$0 sm:$0xff] }
 0x3ac   : > { %v2181_v45 = vmul.f32 %v3027_v34, %v2142_v16  ;;  %v2583_v16 = vld [vmem:[%s3954_s11] ss:$0 sm:$0xff] }
 0x3ad   : > { %2830 = vmatpush3.bf16.msra.mxu0 %v2827_v23 }
 0x3ae   : > { %2832 = vmatprep.subr.bf16.mxu0 %v2831_v42  ;;  %v2148_v38 = vpop.permute.xlu1 %2147  ;;  %v2835_v55 = vpack.c.bf16 %v2182_v33, %v2181_v45 }
 0x3af   : > { %v2184_v17 = vmul.f32 %v3031_v25, %v2148_v38  ;;  %v2342_v38 = vld [vmem:[%s3946_s3 + $0x8] sm:$0xff] }
 0x3b0   : > { %v2146_v62 = vpop.permute.xlu0 %2145 }
 0x3b1   : > { %2834 = vmatpush3.bf16.msra.mxu0 %v2831_v42  ;;  %v2183_v44 = vmul.f32 %v3035_v50, %v2146_v62 }
 0x3b2   : > { %2836 = vmatprep.subr.bf16.mxu0 %v2835_v55 }
 0x3b3   : > { %v2839_v46 = vpack.c.bf16 %v2184_v17, %v2183_v44 }
 0x3b4   : > { %v2152_v49 = vpop.permute.xlu1 %2151 }
 0x3b5   : > { %2838 = vmatpush3.bf16.msra.mxu0 %v2835_v55  ;;  %v2186_v53 = vmul.f32 %v3041_v48, %v2152_v49 }
 0x3b6   : > { %2840 = vmatprep.subr.bf16.mxu0 %v2839_v46 }
 0x3b9   : > { %2842 = vmatpush3.bf16.msra.mxu0 %v2839_v46 }
 0x3c0   : > { %v2150_v52 = vpop.permute.xlu0 %2149 }
 0x3c1   : > { %v2185_v36 = vmul.f32 %v3043_v51, %v2150_v52 }
 0x3c2   : > { %v2156_v58 = vpop.permute.xlu1 %2155 }
 0x3c3   : > { %v2843_v61 = vpack.c.bf16 %v2186_v53, %v2185_v36  ;;  %v2188_v0 = vmul.f32 %v3045_v56, %v2156_v58 }
 0x3c4   : > { %v2154_v35 = vpop.permute.xlu0 %2153 }
 0x3c5   : > { %v2187_v1 = vmul.f32 %v3047_v57, %v2154_v35  ;;  %2844 = vmatprep.subr.bf16.mxu0 %v2843_v61 }
 0x3c6   : > { %2846 = vmatpush3.bf16.msra.mxu0 %v2843_v61 }
 0x3c7   : > { %v2847_v60 = vpack.c.bf16 %v2188_v0, %v2187_v1 }
 0x3c9   : > { %2848 = vmatprep.subr.bf16.mxu0 %v2847_v60 }
 0x3ca   : > { %2850 = vmatpush3.bf16.msra.mxu0 %v2847_v60 }
 0x3cd   : > { %2793 = vmatmul.mubr.msk.f32.vlgmr.msra.gmra.mrb[0].mxu0 %vm2205_vm15, %v3116_v13 }
 0x4a0   : > { %v2794_v5 = vpop.f32.mrb[0].mxu0 }
 0x4a1   : > { %2288 = vst.msk [vmem:[#allocation10 + $0x8] sm:$0xff] %vm2286_vm0, %v2794_v5  ;;  %v2276_v7 = vpop.f32.mrb[1].mxu0 }
 0x4a2   : > { %2287 = vst.msk [vmem:[#allocation10] sm:$0xff] %vm2286_vm0, %v2276_v7 }
 0x4a8   : > { %v2293_v9 = vld [vmem:[#allocation10 + $0x8] sm:$0xff] }
 0x4a9   : > { %v2295_v12 = vsel %vm2286_vm0, %v2293_v9, 0.0  ;;  %v2292_v18 = vld [vmem:[#allocation10] sm:$0xff] }
 0x4aa   : > { %v2294_v2 = vsel %vm2286_vm0, %v2292_v18, 0.0 }
 0x4ab   : > { %v2296_v19 = vadd.f32 %v2295_v12, %v2294_v2 }
 0x4ad   : > { %v2297_v6 = vrot.slane %v2296_v19, 4 }
 0x4af   : > { %v2298_v8 = vadd.f32 %v2297_v6, %v2296_v19 }
 0x4b1   : > { %v2299_v40 = vrot.slane %v2298_v8, 2 }
 0x4b3   : > { %v2300_v24 = vadd.f32 %v2299_v40, %v2298_v8 }
 0x4b5   : > { %v2301_v20 = vrot.slane %v2300_v24, 1 }
 0x4b7   : > { %v2302_v13 = vadd.f32 %v2301_v20, %v2300_v24 }
 0x4b9   : > { %v2304_v22 = vmul.f32 0.0625, %v2302_v13 }
 0x4bb   : > { %v2305_v14 = vsub.f32 %v2292_v18, %v2304_v22  ;;  %v2306_v10 = vsub.f32 %v2293_v9, %v2304_v22 }
 0x4bd   : > { %v2307_v26 = vmul.f32 %v2305_v14, %v2305_v14  ;;  %v2308_v21 = vmul.f32 %v2306_v10, %v2306_v10 }
 0x4bf   : > { %v2309_v11 = vsel %vm2286_vm0, %v2307_v26, 0.0  ;;  %v2310_v27 = vsel %vm2286_vm0, %v2308_v21, 0.0 }
 0x4c0   : > { %v2311_v28 = vadd.f32 %v2310_v27, %v2309_v11 }
 0x4c2   : > { %v2312_v30 = vrot.slane %v2311_v28, 4 }
 0x4c4   : > { %v2313_v23 = vadd.f32 %v2312_v30, %v2311_v28 }
 0x4c6   : > { %v2314_v15 = vrot.slane %v2313_v23, 2 }
 0x4c8   : > { %v2315_v47 = vadd.f32 %v2314_v15, %v2313_v23 }
 0x4ca   : > { %v2316_v32 = vrot.slane %v2315_v47, 1 }
 0x4cc   : > { %v2317_v41 = vadd.f32 %v2316_v32, %v2315_v47 }
 0x4ce   : > { %v2318_v31 = vmul.f32 0.0625, %v2317_v41 }
 0x4d0   : > { %v2319_v34 = vadd.f32 1e-05, %v2318_v31 }
 0x4d2   : > { %3048 = vrsqrt.f32 %v2319_v34 }
 0x4dc   : > { %v3049_v42 = vpop.eup %3048 }
 0x4dd   : > { %v2321_v33 = vmul.f32 %v3049_v42, %v2305_v14  ;;  %v2322_v63 = vmul.f32 %v3049_v42, %v2306_v10 }
 0x4df   : > { %v2330_v25 = vmul.f32 %v2582_v43, %v2321_v33  ;;  %v2331_v45 = vmul.f32 %v2582_v43, %v2322_v63 }
 0x4e1   : > { %v2339_v50 = vadd.f32 %v2583_v16, %v2330_v25  ;;  %v2340_v55 = vadd.f32 %v2583_v16, %v2331_v45 }
 0x4e3   : > { %v2343_v39 = vadd.f32 %v2341_v37, %v2339_v50  ;;  %v2344_v59 = vadd.f32 %v2342_v38, %v2340_v55 }
 0x4e5   : > { %v2347_v17 = vmul.f32 1.442695, %v2343_v39  ;;  %v2349_v62 = vmul.f32 1.442695, %v2344_v59  ;;  %vm2345_vm2 = vcmp.gt.f32.partialorder %v2343_v39, 20.0  ;;  %vm2346_vm5 = vcmp.gt.f32.partialorder %v2344_v59, 20.0 }
 0x4e7   : > { %3050 = vpow2.f32 %v2347_v17 }
 0x4e8   : > { %3052 = vpow2.f32 %v2349_v62 }
 0x4f1   : > { %v3051_v29 = vpop.eup %3050 }
 0x4f2   : > { %v3053_v3 = vpop.eup %3052  ;;  %v2351_v44 = vadd.f32 1.0, %v3051_v29  ;;  %v2354_v46 = vmul.f32 -0.5, %v3051_v29  ;;  %v2357_v49 = vand.u32 2147483647, %v3051_v29 }
 0x4f3   : > { %v2360_v54 = vadd.f32 1.0, %v3053_v3  ;;  %v2363_v4 = vmul.f32 -0.5, %v3053_v3  ;;  %v2366_v53 = vand.u32 2147483647, %v3053_v3 }
 0x4f4   : > { %3054 = vlog2.f32 %v2351_v44  ;;  %v2355_v48 = vadd.f32 1.0, %v2354_v46  ;;  %vm2358_vm1 = vcmp.lt.f32.partialorder %v2357_v49, 0.0004427343 }
 0x4f5   : > { %3056 = vlog2.f32 %v2360_v54  ;;  %v2364_v51 = vadd.f32 1.0, %v2363_v4  ;;  %vm2367_vm4 = vcmp.lt.f32.partialorder %v2366_v53, 0.0004427343 }
 0x4f6   : > { %v2356_v57 = vmul.f32 %v3051_v29, %v2355_v48 }
 0x4f7   : > { %v2365_v61 = vmul.f32 %v3053_v3, %v2364_v51 }
 0x4fe   : > { %v3055_v56 = vpop.eup %3054 }
 0x4ff   : > { %v3057_v52 = vpop.eup %3056  ;;  %v2353_v36 = vmul.f32 0.6931472, %v3055_v56 }
 0x500   : > { %v2362_v58 = vmul.f32 0.6931472, %v3057_v52 }
 0x501   : > { %v2359_v0 = vsel %vm2358_vm1, %v2356_v57, %v2353_v36 }
 0x502   : > { %v2368_v35 = vsel %vm2367_vm4, %v2365_v61, %v2362_v58  ;;  %v2369_v1 = vsel %vm2345_vm2, %v2343_v39, %v2359_v0 }
 0x503   : > { %v2370_v60 = vsel %vm2346_vm5, %v2344_v59, %v2368_v35  ;;  %2371 = vst.msk [vmem:[#allocation11] sm:$0xff] %vm2286_vm0, %v2369_v1 }
 0x504   : > { %2372 = vst.msk [vmem:[#allocation11 + $0x8] sm:$0xff] %vm2286_vm0, %v2370_v60 }
 0x505 PF: > { %p3908_p8 = scmp.eq.s32.totalorder %s2462_s24, 2  ;;  %s3117_s26 = smov [#allocation11]  }
 0x506   : > { %s2379_s27 = sshll.u32 %s3117_s26, 4  ;;  %s2380_s27 = int_to_ptr.vmem [resolvable:$true] %s2379_s27 }
 0x507   : > { %s3058_s28 = scalar_lea.vmem %s2380_s27, 256  ;;  %p3065_p12 = scmp.lt.s32.totalorder %s2380_s27, %s2380_s27 }
 0x508   : > { %p3059_p9 = scmp.ne.s32.totalorder %s2380_s27, %s3058_s28  ;;  %p3066_p13 = scmp.lt.s32.totalorder %s3058_s28, %s3058_s28 }
 0x50a   : > { %p3060_p10 = pnand %p3059_p9, %p3908_p8  ;;  %p3067_p0 = por %p3066_p13, %p3065_p12 }
 0x50c   : > { %p3061_p11 = pneg %p3060_p10 }
 0x50e   : > { %p3068_p1 = pnand %p3067_p0, %p3061_p11 }
 0x510   : > { %3071 = shalt.err (!%p3068_p1)
}
 0x511   : > { %s3072_s24 = scalar_lea.hbm %s3955_s12, 256 }
 0x512   : > { %p3073_p2 = scmp.ne.s32.totalorder %s3955_s12, %s3072_s24  ;;  %p3078_p5 = scmp.lt.u32.totalorder %s3072_s24, %s3955_s12 }
 0x514   : > { %p3074_p3 = pnand %p3073_p2, %p3908_p8 }
 0x516   : > { %p3075_p4 = pneg %p3074_p3 }
 0x518   : > { %p3080_p6 = pnand %p3078_p5, %p3075_p4 }
 0x51a   : > { %3083 = shalt.err (!%p3080_p6)
}
 0x51b   : > { %s3118_s16 = smov 128   ;;  %s3119_s17 = smov 8  }
 0x51c   : > { %2870 = dma.vmem_to_hbm [thread:$0]  (%p3908_p8), %s2380_s27, 256, %s3955_s12, [#allocation12], %s3118_s16, %s3118_s16, %s3119_s17  }
 0x51d   : > { %3097 = dma.done.wait (%p3908_p8), [#allocation12], 256  }
 0x51e   : > { %3099 = vsyncadd (%p3908_p8), [#allocation12], 4294967040 }
 0x51f PF: > { %s23_s23 = sadd.s32 1, %s3110_s23   ;;  %s3987_s21 = smov %s3106_s22 }
 0x520   : > { %p20_p7 = scmp.ge.s32.totalorder %s23_s23, 5   ;;  %s3988_s22 = smov %s3990_s25 }
 0x522   :  { %22 = sbr.rel (!%p20_p7) target bundleno = 2 (0x2), region = 133 }
 0x529   :  { %2395 = vsyncpa [#allocation12], 1 }
 0x52a   :  { %2397 = vsyncpa [#allocation12 + $0x1], 1 }

</bundles_post_ra>
